<compile_context>
chip_gen: v7x
topology: tpu7x:2x2x1
jax: 0.10.0
libtpu: 0.0.40
codegen_flags: <defaults>
</compile_context>

<pallas_src>
import functools

import jax
import jax.numpy as jnp
from jax.experimental import pallas as pl
from jax.experimental.pallas import tpu as pltpu

# --------------------------- small synthetic config ---------------------------
VOCAB = 64
MAX_POS = 32
TYPE_VOCAB = 2
HIDDEN = 128              # stands in for 768
NUM_HEADS = 2
HEAD_DIM = HIDDEN // NUM_HEADS
INTERMEDIATE = 256
NUM_LAYERS = 2
NUM_CLASSES = 10
NUM_CLASSES_PAD = 128     # lane-dense padded logits (sliced to 10 outside)
LN_EPS = 1e-12

LANE = 128                                  # per-head padded slot width
QKV_W = NUM_HEADS * 3 * LANE                # packed/padded QKV width
CTX_W = NUM_HEADS * LANE                    # packed/padded context width
BATCH_BLOCK = 2                             # whole toy batch per grid step
                                            # (use >=2 blocks on v7x for both TCs)


# ------------------------------- kernel helpers -------------------------------
def _layernorm(y, gamma, beta, eps):
    """f32 LayerNorm over the lane axis. gamma/beta are (1, H) rows."""
    mean = jnp.mean(y, axis=-1, keepdims=True)
    var = jnp.mean(jnp.square(y - mean), axis=-1, keepdims=True)
    return (y - mean) * jax.lax.rsqrt(var + eps) * gamma + beta


# ------------------------------- fused encoder kernel -------------------------
def _encoder_kernel(x_ref, bias_ref, emb_g_ref, emb_b_ref,
                    wqkv_ref, bqkv_ref, wo_ref, bo_ref,
                    ln1_g_ref, ln1_b_ref, w1_ref, b1_ref, w2_ref, b2_ref,
                    ln2_g_ref, ln2_b_ref,
                    pool_w_ref, pool_b_ref, fc_w_ref, fc_b_ref,
                    logits_ref, h_sc, ctx_sc, *, scale, eps, bb, s):
    layer = pl.program_id(1)

    # ---- layer step 0: embedding LayerNorm into the resident residual stream.
    @pl.when(layer == 0)
    def _():
        x = x_ref[...].astype(jnp.float32).reshape(bb * s, HIDDEN)
        h_sc[...] = _layernorm(x, emb_g_ref[...], emb_b_ref[...], eps)

    h = h_sc[...]                                            # (bb*s, H) f32
    h_bf = h.astype(jnp.bfloat16)

    # ---- fused QKV projection over all tokens in the batch block (one MXU pass).
    qkv = (jnp.dot(h_bf, wqkv_ref[...], preferred_element_type=jnp.float32)
           + bqkv_ref[...])                                  # (bb*s, QKV_W) f32

    # ---- attention: per (batch, head) with 128-lane-aligned padded head slots;
    #      contexts written straight into the VMEM ctx scratch (no lane concat).
    for b in range(bb):
        r0 = b * s
        bias = bias_ref[b]                                   # (1, s) additive mask
        for hd in range(NUM_HEADS):
            c0 = hd * 3 * LANE
            qh = qkv[r0:r0 + s, c0:c0 + LANE].astype(jnp.bfloat16)
            kh = qkv[r0:r0 + s, c0 + LANE:c0 + 2 * LANE].astype(jnp.bfloat16)
            vh = qkv[r0:r0 + s, c0 + 2 * LANE:c0 + 3 * LANE].astype(jnp.bfloat16)
            # q @ k^T via dot_general dimension numbers (no materialized transpose).
            scores = jax.lax.dot_general(
                qh, kh, (((1,), (1,)), ((), ())),
                preferred_element_type=jnp.float32) * scale + bias   # (s, s)
            scores = scores - jnp.max(scores, axis=-1, keepdims=True)
            p = jnp.exp(scores)
            p = p * pl.reciprocal(jnp.sum(p, axis=-1, keepdims=True), approx=True)
            ctx_sc[r0:r0 + s, hd * LANE:(hd + 1) * LANE] = jnp.dot(
                p.astype(jnp.bfloat16), vh, preferred_element_type=jnp.float32)

    # ---- output projection + residual + LayerNorm.
    attn = (jnp.dot(ctx_sc[...].astype(jnp.bfloat16), wo_ref[...],
                    preferred_element_type=jnp.float32) + bo_ref[...])
    h1 = _layernorm(attn + h, ln1_g_ref[...], ln1_b_ref[...], eps)

    # ---- feed-forward + residual + LayerNorm.
    f = (jnp.dot(h1.astype(jnp.bfloat16), w1_ref[...],
                 preferred_element_type=jnp.float32) + b1_ref[...])
    # TODO(synk): HF BERT/RoBERTa use exact erf GELU; tanh approximation kept here
    # for guaranteed Mosaic lowering.
    f = jax.nn.gelu(f)
    f2 = (jnp.dot(f.astype(jnp.bfloat16), w2_ref[...],
                  preferred_element_type=jnp.float32) + b2_ref[...])
    h_sc[...] = _layernorm(f2 + h1, ln2_g_ref[...], ln2_b_ref[...], eps)

    # ---- last layer step: pooler tanh dense on [CLS] + Dropout(0.5) identity
    #      (eval mode) + padded fc head, written into the lane-dense logits block.
    @pl.when(layer == pl.num_programs(1) - 1)
    def _():
        cls = jnp.concatenate([h_sc[pl.ds(b * s, 1), :] for b in range(bb)], axis=0)
        feat = jnp.tanh(jnp.dot(cls.astype(jnp.bfloat16), pool_w_ref[...],
                                preferred_element_type=jnp.float32) + pool_b_ref[...])
        # self.l2 = Dropout(0.5): identity in eval mode.
        logits = (jnp.dot(feat.astype(jnp.bfloat16), fc_w_ref[...],
                          preferred_element_type=jnp.float32) + fc_b_ref[...])
        logits_ref[...] = logits.astype(logits_ref.dtype)


# ------------------------------ pallas_call wrapper ----------------------------
def fused_encoder(params, x_bf16, bias):
    B, S, H = x_bf16.shape
    assert B % BATCH_BLOCK == 0
    nbb = B // BATCH_BLOCK
    L = NUM_LAYERS

    def lw(*shape):    # stacked per-layer weight: squeeze the layer dim, index by l
        nd = len(shape)
        return pl.BlockSpec((None,) + shape, lambda bb, l, nd=nd: (l,) + (0,) * nd)

    def const(*shape):  # layer-invariant parameter
        nd = len(shape)
        return pl.BlockSpec(shape, lambda bb, l, nd=nd: (0,) * nd)

    kernel = functools.partial(_encoder_kernel, scale=1.0 / (HEAD_DIM ** 0.5),
                               eps=LN_EPS, bb=BATCH_BLOCK, s=S)
    return pl.pallas_call(
        kernel,
        out_shape=jax.ShapeDtypeStruct((B, NUM_CLASSES_PAD), jnp.float32),
        grid=(nbb, L),
        in_specs=[
            pl.BlockSpec((BATCH_BLOCK, S, H), lambda bb, l: (bb, 0, 0)),   # embeddings
            pl.BlockSpec((BATCH_BLOCK, 1, S), lambda bb, l: (bb, 0, 0)),   # mask bias
            const(1, H), const(1, H),                                      # emb LN g/b
            lw(H, QKV_W), lw(1, QKV_W),                                    # wqkv, bqkv
            lw(CTX_W, H), lw(1, H),                                        # wo, bo
            lw(1, H), lw(1, H),                                            # ln1 g/b
            lw(H, INTERMEDIATE), lw(1, INTERMEDIATE),                      # w1, b1
            lw(INTERMEDIATE, H), lw(1, H),                                 # w2, b2
            lw(1, H), lw(1, H),                                            # ln2 g/b
            const(H, H), const(1, H),                                      # pooler w/b
            const(H, NUM_CLASSES_PAD), const(1, NUM_CLASSES_PAD),          # fc w/b
        ],
        out_specs=pl.BlockSpec((BATCH_BLOCK, NUM_CLASSES_PAD), lambda bb, l: (bb, 0)),
        scratch_shapes=[
            pltpu.VMEM((BATCH_BLOCK * S, H), jnp.float32),        # residual stream
            pltpu.VMEM((BATCH_BLOCK * S, CTX_W), jnp.float32),    # attention contexts
        ],
        compiler_params=pltpu.CompilerParams(
            dimension_semantics=("parallel", "arbitrary"),
            vmem_limit_bytes=32 * 1024 * 1024),
    )(x_bf16, bias,
      params["emb_ln_g"], params["emb_ln_b"],
      params["wqkv"], params["bqkv"], params["wo"], params["bo"],
      params["ln1_g"], params["ln1_b"],
      params["w1"], params["b1"], params["w2"], params["b2"],
      params["ln2_g"], params["ln2_b"],
      params["pool_w"], params["pool_b"], params["fc_w"], params["fc_b"])


# ------------------------------ parameter setup -------------------------------
def _pack_qkv(wq, wk, wv):
    """(H, NUM_HEADS, HEAD_DIM) x3 -> (H, QKV_W) with each head's Q|K|V padded to
    128-lane slots so all per-head slices are lane-aligned."""
    w = jnp.zeros((HIDDEN, QKV_W), jnp.float32)
    for hd in range(NUM_HEADS):
        base = hd * 3 * LANE
        w = w.at[:, base:base + HEAD_DIM].set(wq[:, hd])
        w = w.at[:, base + LANE:base + LANE + HEAD_DIM].set(wk[:, hd])
        w = w.at[:, base + 2 * LANE:base + 2 * LANE + HEAD_DIM].set(wv[:, hd])
    return w


def _pack_wo(wo):
    """(NUM_HEADS, HEAD_DIM, H) -> (CTX_W, H): zero-padded rows for head-pad lanes."""
    w = jnp.zeros((CTX_W, HIDDEN), jnp.float32)
    for hd in range(NUM_HEADS):
        w = w.at[hd * LANE:hd * LANE + HEAD_DIM, :].set(wo[hd])
    return w


def init_params(key):
    keys = iter(jax.random.split(key, 32))

    def norm(shape):
        return 0.02 * jax.random.normal(next(keys), shape, jnp.float32)

    wqkv, wo, w1, w2 = [], [], [], []
    for _ in range(NUM_LAYERS):
        wq = norm((HIDDEN, NUM_HEADS, HEAD_DIM))
        wk = norm((HIDDEN, NUM_HEADS, HEAD_DIM))
        wv = norm((HIDDEN, NUM_HEADS, HEAD_DIM))
        wqkv.append(_pack_qkv(wq, wk, wv))
        wo.append(_pack_wo(norm((NUM_HEADS, HEAD_DIM, HIDDEN))))
        w1.append(norm((HIDDEN, INTERMEDIATE)))
        w2.append(norm((INTERMEDIATE, HIDDEN)))

    L = NUM_LAYERS
    params = {
        "word_emb": norm((VOCAB, HIDDEN)),
        "pos_emb": norm((MAX_POS, HIDDEN)),
        "type_emb": norm((TYPE_VOCAB, HIDDEN)),
        "emb_ln_g": jnp.ones((1, HIDDEN), jnp.float32),
        "emb_ln_b": jnp.zeros((1, HIDDEN), jnp.float32),
        # Per-layer weights stacked with a leading layer axis (indexed by the grid).
        "wqkv": jnp.stack(wqkv).astype(jnp.bfloat16),          # (L, H, QKV_W)
        "bqkv": jnp.zeros((L, 1, QKV_W), jnp.float32),
        "wo": jnp.stack(wo).astype(jnp.bfloat16),              # (L, CTX_W, H)
        "bo": jnp.zeros((L, 1, HIDDEN), jnp.float32),
        "ln1_g": jnp.ones((L, 1, HIDDEN), jnp.float32),
        "ln1_b": jnp.zeros((L, 1, HIDDEN), jnp.float32),
        "w1": jnp.stack(w1).astype(jnp.bfloat16),              # (L, H, I)
        "b1": jnp.zeros((L, 1, INTERMEDIATE), jnp.float32),
        "w2": jnp.stack(w2).astype(jnp.bfloat16),              # (L, I, H)
        "b2": jnp.zeros((L, 1, HIDDEN), jnp.float32),
        "ln2_g": jnp.ones((L, 1, HIDDEN), jnp.float32),
        "ln2_b": jnp.zeros((L, 1, HIDDEN), jnp.float32),
        "pool_w": norm((HIDDEN, HIDDEN)).astype(jnp.bfloat16),
        "pool_b": jnp.zeros((1, HIDDEN), jnp.float32),
    }
    fc_w = norm((HIDDEN, NUM_CLASSES))
    params["fc_w"] = (jnp.zeros((HIDDEN, NUM_CLASSES_PAD), jnp.float32)
                      .at[:, :NUM_CLASSES].set(fc_w)).astype(jnp.bfloat16)
    params["fc_b"] = jnp.zeros((1, NUM_CLASSES_PAD), jnp.float32)
    return params


# --------------------------------- forward ------------------------------------
def bert_class_forward(params, ids, mask, token_type_ids):
    """Mirrors BERTClass.forward: encoder -> pooled features -> dropout -> fc."""
    B, S = ids.shape

    # Data-dependent gathers stay in XLA glue; everything dense runs in the kernel.
    # RoBERTa-style position ids: pad tokens get padding_idx(=1), real tokens get
    # cumulative positions starting at padding_idx + 1.
    pos_ids = (jnp.cumsum(mask, axis=1) * mask + 1).astype(jnp.int32)
    x = (jnp.take(params["word_emb"], ids, axis=0)
         + jnp.take(params["pos_emb"], pos_ids, axis=0)
         + jnp.take(params["type_emb"], token_type_ids, axis=0))       # (B, S, H) f32

    # Additive attention bias computed once for all layers (lane-dense (B,1,S)).
    bias = ((mask.astype(jnp.float32) - 1.0) * 1e9).reshape(B, 1, S)

    logits_pad = fused_encoder(params, x.astype(jnp.bfloat16), bias)
    return logits_pad[:, :NUM_CLASSES]


# ----------------------------------- main --------------------------------------
if __name__ == "__main__":
    key = jax.random.PRNGKey(0)
    k_params, k_ids = jax.random.split(key)
    params = init_params(k_params)

    B, S = 2, 16
    ids = jax.random.randint(k_ids, (B, S), 0, VOCAB, dtype=jnp.int32)
    mask = jnp.ones((B, S), jnp.int32).at[1, 12:].set(0)   # second sequence padded
    token_type_ids = jnp.zeros((B, S), jnp.int32)

    logits = jax.jit(bert_class_forward)(params, ids, mask, token_type_ids)
    logits = jax.block_until_ready(logits)
    assert logits.shape == (B, NUM_CLASSES) and logits.dtype == jnp.float32
    assert bool(jnp.all(jnp.isfinite(logits)))
    print("KERNEL_OK")
</pallas_src>

<mosaic_0001>
module attributes {stable_mosaic.version = 11 : i64} {
  func.func @_encoder_kernel(%arg0: i32, %arg1: i32, %arg2: memref<2x16x128xbf16, #tpu.memory_space<vmem>>, %arg3: memref<2x1x16xf32, #tpu.memory_space<vmem>>, %arg4: memref<1x128xf32, #tpu.memory_space<vmem>>, %arg5: memref<1x128xf32, #tpu.memory_space<vmem>>, %arg6: memref<1x128x768xbf16, #tpu.memory_space<vmem>>, %arg7: memref<1x1x768xf32, #tpu.memory_space<vmem>>, %arg8: memref<1x256x128xbf16, #tpu.memory_space<vmem>>, %arg9: memref<1x1x128xf32, #tpu.memory_space<vmem>>, %arg10: memref<1x1x128xf32, #tpu.memory_space<vmem>>, %arg11: memref<1x1x128xf32, #tpu.memory_space<vmem>>, %arg12: memref<1x128x256xbf16, #tpu.memory_space<vmem>>, %arg13: memref<1x1x256xf32, #tpu.memory_space<vmem>>, %arg14: memref<1x256x128xbf16, #tpu.memory_space<vmem>>, %arg15: memref<1x1x128xf32, #tpu.memory_space<vmem>>, %arg16: memref<1x1x128xf32, #tpu.memory_space<vmem>>, %arg17: memref<1x1x128xf32, #tpu.memory_space<vmem>>, %arg18: memref<128x128xbf16, #tpu.memory_space<vmem>>, %arg19: memref<1x128xf32, #tpu.memory_space<vmem>>, %arg20: memref<128x128xbf16, #tpu.memory_space<vmem>>, %arg21: memref<1x128xf32, #tpu.memory_space<vmem>>, %arg22: memref<2x128xf32, #tpu.memory_space<vmem>>, %arg23: memref<32x128xf32, #tpu.memory_space<vmem>>, %arg24: memref<32x256xf32, #tpu.memory_space<vmem>>) attributes {dimension_semantics = [#tpu.dimension_semantics<parallel>, #tpu.dimension_semantics<arbitrary>], iteration_bounds = array<i64: 1, 2>, scalar_prefetch = 0 : i64, scratch_operands = 2 : i64, tpu.core_type = #tpu.core_type<tc>, window_params = [{transform_indices = @transform_0, window_bounds = array<i64: 2, 16, 128>}, {transform_indices = @transform_1, window_bounds = array<i64: 2, 1, 16>}, {pipeline_mode = #tpu.pipeline_mode<synchronous>, transform_indices = @transform_2, window_bounds = array<i64: 1, 128>}, {pipeline_mode = #tpu.pipeline_mode<synchronous>, transform_indices = @transform_3, window_bounds = array<i64: 1, 128>}, {transform_indices = @transform_4, window_bounds = array<i64: 1, 128, 768>}, {transform_indices = @transform_5, window_bounds = array<i64: 1, 1, 768>}, {transform_indices = @transform_6, window_bounds = array<i64: 1, 256, 128>}, {transform_indices = @transform_7, window_bounds = array<i64: 1, 1, 128>}, {transform_indices = @transform_8, window_bounds = array<i64: 1, 1, 128>}, {transform_indices = @transform_9, window_bounds = array<i64: 1, 1, 128>}, {transform_indices = @transform_10, window_bounds = array<i64: 1, 128, 256>}, {transform_indices = @transform_11, window_bounds = array<i64: 1, 1, 256>}, {transform_indices = @transform_12, window_bounds = array<i64: 1, 256, 128>}, {transform_indices = @transform_13, window_bounds = array<i64: 1, 1, 128>}, {transform_indices = @transform_14, window_bounds = array<i64: 1, 1, 128>}, {transform_indices = @transform_15, window_bounds = array<i64: 1, 1, 128>}, {pipeline_mode = #tpu.pipeline_mode<synchronous>, transform_indices = @transform_16, window_bounds = array<i64: 128, 128>}, {pipeline_mode = #tpu.pipeline_mode<synchronous>, transform_indices = @transform_17, window_bounds = array<i64: 1, 128>}, {pipeline_mode = #tpu.pipeline_mode<synchronous>, transform_indices = @transform_18, window_bounds = array<i64: 128, 128>}, {pipeline_mode = #tpu.pipeline_mode<synchronous>, transform_indices = @transform_19, window_bounds = array<i64: 1, 128>}, {transform_indices = @transform_20, window_bounds = array<i64: 2, 128>}]} {
    %c0_i32 = arith.constant 0 : i32
    %0 = arith.cmpi eq, %arg1, %c0_i32 : i32
    %1 = arith.extui %0 : i1 to i32
    %c0_i32_0 = arith.constant 0 : i32
    %2 = arith.cmpi ne, %1, %c0_i32_0 : i32
    scf.if %2 {
      %c0_91 = arith.constant 0 : index
      %c0_92 = arith.constant 0 : index
      %c0_93 = arith.constant 0 : index
      %208 = vector.load %arg2[%c0_91, %c0_92, %c0_93] : memref<2x16x128xbf16, #tpu.memory_space<vmem>>, vector<2x16x128xbf16>
      %209 = arith.extf %208 : vector<2x16x128xbf16> to vector<2x16x128xf32>
      %210 = vector.shape_cast %209 : vector<2x16x128xf32> to vector<32x128xf32>
      %c0_94 = arith.constant 0 : index
      %c0_95 = arith.constant 0 : index
      %211 = vector.load %arg4[%c0_94, %c0_95] : memref<1x128xf32, #tpu.memory_space<vmem>>, vector<1x128xf32>
      %c0_96 = arith.constant 0 : index
      %c0_97 = arith.constant 0 : index
      %212 = vector.load %arg5[%c0_96, %c0_97] : memref<1x128xf32, #tpu.memory_space<vmem>>, vector<1x128xf32>
      %cst_98 = arith.constant dense<0.000000e+00> : vector<32xf32>
      %213 = vector.multi_reduction <add>, %210, %cst_98 [1] : vector<32x128xf32> to vector<32xf32>
      %214 = vector.shape_cast %213 : vector<32xf32> to vector<32x1xf32>
      %cst_99 = arith.constant 1.280000e+02 : f32
      %215 = vector.broadcast %cst_99 : f32 to vector<32x1xf32>
      %216 = arith.divf %214, %215 : vector<32x1xf32>
      %217 = vector.broadcast %216 : vector<32x1xf32> to vector<32x128xf32>
      %218 = arith.subf %210, %217 : vector<32x128xf32>
      %219 = arith.mulf %218, %218 : vector<32x128xf32>
      %cst_100 = arith.constant dense<0.000000e+00> : vector<32xf32>
      %220 = vector.multi_reduction <add>, %219, %cst_100 [1] : vector<32x128xf32> to vector<32xf32>
      %221 = vector.shape_cast %220 : vector<32xf32> to vector<32x1xf32>
      %cst_101 = arith.constant 1.280000e+02 : f32
      %222 = vector.broadcast %cst_101 : f32 to vector<32x1xf32>
      %223 = arith.divf %221, %222 : vector<32x1xf32>
      %224 = vector.broadcast %216 : vector<32x1xf32> to vector<32x128xf32>
      %225 = arith.subf %210, %224 : vector<32x128xf32>
      %cst_102 = arith.constant 9.99999996E-13 : f32
      %226 = vector.broadcast %cst_102 : f32 to vector<32x1xf32>
      %227 = arith.addf %223, %226 : vector<32x1xf32>
      %228 = math.rsqrt %227 : vector<32x1xf32>
      %229 = vector.broadcast %228 : vector<32x1xf32> to vector<32x128xf32>
      %230 = arith.mulf %225, %229 : vector<32x128xf32>
      %231 = vector.broadcast %211 : vector<1x128xf32> to vector<32x128xf32>
      %232 = arith.mulf %230, %231 : vector<32x128xf32>
      %233 = vector.broadcast %212 : vector<1x128xf32> to vector<32x128xf32>
      %234 = arith.addf %232, %233 : vector<32x128xf32>
      %c0_103 = arith.constant 0 : index
      %c0_104 = arith.constant 0 : index
      %235 = vector.load %arg23[%c0_103, %c0_104] : memref<32x128xf32, #tpu.memory_space<vmem>>, vector<32x128xf32>
      tpu.vector_store %arg23[%c0_103, %c0_104], %234 {strides = array<i32>} : memref<32x128xf32, #tpu.memory_space<vmem>>, vector<32x128xf32>,
    } else {
    }
    %c0 = arith.constant 0 : index
    %c0_1 = arith.constant 0 : index
    %3 = vector.load %arg23[%c0, %c0_1] : memref<32x128xf32, #tpu.memory_space<vmem>>, vector<32x128xf32>
    %4 = arith.truncf %3 : vector<32x128xf32> to vector<32x128xbf16>
    %c0_2 = arith.constant 0 : index
    %c0_3 = arith.constant 0 : index
    %c0_4 = arith.constant 0 : index
    %5 = vector.load %arg6[%c0_2, %c0_3, %c0_4] : memref<1x128x768xbf16, #tpu.memory_space<vmem>>, vector<1x128x768xbf16>
    %6 = vector.shape_cast %5 : vector<1x128x768xbf16> to vector<128x768xbf16>
    %cst = arith.constant dense<0.000000e+00> : vector<32x768xf32>
    %7 = tpu.matmul %4, %6, %cst {dimension_numbers = #tpu.dot_dimension_numbers<[1], [0], [0], [1], [0, 0, 1, 1], [], []>} : vector<32x128xbf16>, vector<128x768xbf16>, vector<32x768xf32> -> vector<32x768xf32>
    %c0_5 = arith.constant 0 : index
    %c0_6 = arith.constant 0 : index
    %c0_7 = arith.constant 0 : index
    %8 = vector.load %arg7[%c0_5, %c0_6, %c0_7] : memref<1x1x768xf32, #tpu.memory_space<vmem>>, vector<1x1x768xf32>
    %9 = vector.shape_cast %8 : vector<1x1x768xf32> to vector<1x768xf32>
    %10 = vector.broadcast %9 : vector<1x768xf32> to vector<32x768xf32>
    %11 = arith.addf %7, %10 : vector<32x768xf32>
    %c0_8 = arith.constant 0 : index
    %c0_9 = arith.constant 0 : index
    %c0_10 = arith.constant 0 : index
    %12 = vector.load %arg3[%c0_8, %c0_9, %c0_10] : memref<2x1x16xf32, #tpu.memory_space<vmem>>, vector<1x1x16xf32>
    %13 = vector.shape_cast %12 : vector<1x1x16xf32> to vector<1x16xf32>
    %14 = vector.extract_strided_slice %11 {offsets = [0, 0], sizes = [16, 128], strides = [1, 1]} : vector<32x768xf32> to vector<16x128xf32>
    %15 = arith.truncf %14 : vector<16x128xf32> to vector<16x128xbf16>
    %16 = vector.extract_strided_slice %11 {offsets = [0, 128], sizes = [16, 128], strides = [1, 1]} : vector<32x768xf32> to vector<16x128xf32>
    %17 = arith.truncf %16 : vector<16x128xf32> to vector<16x128xbf16>
    %18 = vector.extract_strided_slice %11 {offsets = [0, 256], sizes = [16, 128], strides = [1, 1]} : vector<32x768xf32> to vector<16x128xf32>
    %19 = arith.truncf %18 : vector<16x128xf32> to vector<16x128xbf16>
    %cst_11 = arith.constant dense<0.000000e+00> : vector<16x16xf32>
    %20 = tpu.matmul %15, %17, %cst_11 {dimension_numbers = #tpu.dot_dimension_numbers<[1], [1], [0], [0], [0, 0, 1, 0], [], []>} : vector<16x128xbf16>, vector<16x128xbf16>, vector<16x16xf32> -> vector<16x16xf32>
    %cst_12 = arith.constant 1.250000e-01 : f32
    %21 = vector.broadcast %cst_12 : f32 to vector<16x16xf32>
    %22 = arith.mulf %20, %21 : vector<16x16xf32>
    %23 = vector.broadcast %13 : vector<1x16xf32> to vector<16x16xf32>
    %24 = arith.addf %22, %23 : vector<16x16xf32>
    %cst_13 = arith.constant dense<0xFF800000> : vector<16xf32>
    %25 = vector.multi_reduction <maximumf>, %24, %cst_13 [1] : vector<16x16xf32> to vector<16xf32>
    %26 = vector.shape_cast %25 : vector<16xf32> to vector<16x1xf32>
    %27 = vector.broadcast %26 : vector<16x1xf32> to vector<16x16xf32>
    %28 = arith.subf %24, %27 : vector<16x16xf32>
    %29 = math.exp %28 : vector<16x16xf32>
    %cst_14 = arith.constant dense<0.000000e+00> : vector<16xf32>
    %30 = vector.multi_reduction <add>, %29, %cst_14 [1] : vector<16x16xf32> to vector<16xf32>
    %31 = vector.shape_cast %30 : vector<16xf32> to vector<16x1xf32>
    %32 = tpu.reciprocal %31 {approx = true} : vector<16x1xf32> -> vector<16x1xf32>
    %33 = vector.broadcast %32 : vector<16x1xf32> to vector<16x16xf32>
    %34 = arith.mulf %29, %33 : vector<16x16xf32>
    %35 = arith.truncf %34 : vector<16x16xf32> to vector<16x16xbf16>
    %cst_15 = arith.constant dense<0.000000e+00> : vector<16x128xf32>
    %36 = tpu.matmul %35, %19, %cst_15 {dimension_numbers = #tpu.dot_dimension_numbers<[1], [0], [0], [1], [0, 0, 1, 1], [], []>} : vector<16x16xbf16>, vector<16x128xbf16>, vector<16x128xf32> -> vector<16x128xf32>
    %c0_16 = arith.constant 0 : index
    %c0_17 = arith.constant 0 : index
    %37 = vector.load %arg24[%c0_16, %c0_17] : memref<32x256xf32, #tpu.memory_space<vmem>>, vector<16x128xf32>
    tpu.vector_store %arg24[%c0_16, %c0_17], %36 {strides = array<i32>} : memref<32x256xf32, #tpu.memory_space<vmem>>, vector<16x128xf32>,
    %38 = vector.extract_strided_slice %11 {offsets = [0, 384], sizes = [16, 128], strides = [1, 1]} : vector<32x768xf32> to vector<16x128xf32>
    %39 = arith.truncf %38 : vector<16x128xf32> to vector<16x128xbf16>
    %40 = vector.extract_strided_slice %11 {offsets = [0, 512], sizes = [16, 128], strides = [1, 1]} : vector<32x768xf32> to vector<16x128xf32>
    %41 = arith.truncf %40 : vector<16x128xf32> to vector<16x128xbf16>
    %42 = vector.extract_strided_slice %11 {offsets = [0, 640], sizes = [16, 128], strides = [1, 1]} : vector<32x768xf32> to vector<16x128xf32>
    %43 = arith.truncf %42 : vector<16x128xf32> to vector<16x128xbf16>
    %cst_18 = arith.constant dense<0.000000e+00> : vector<16x16xf32>
    %44 = tpu.matmul %39, %41, %cst_18 {dimension_numbers = #tpu.dot_dimension_numbers<[1], [1], [0], [0], [0, 0, 1, 0], [], []>} : vector<16x128xbf16>, vector<16x128xbf16>, vector<16x16xf32> -> vector<16x16xf32>
    %cst_19 = arith.constant 1.250000e-01 : f32
    %45 = vector.broadcast %cst_19 : f32 to vector<16x16xf32>
    %46 = arith.mulf %44, %45 : vector<16x16xf32>
    %47 = vector.broadcast %13 : vector<1x16xf32> to vector<16x16xf32>
    %48 = arith.addf %46, %47 : vector<16x16xf32>
    %cst_20 = arith.constant dense<0xFF800000> : vector<16xf32>
    %49 = vector.multi_reduction <maximumf>, %48, %cst_20 [1] : vector<16x16xf32> to vector<16xf32>
    %50 = vector.shape_cast %49 : vector<16xf32> to vector<16x1xf32>
    %51 = vector.broadcast %50 : vector<16x1xf32> to vector<16x16xf32>
    %52 = arith.subf %48, %51 : vector<16x16xf32>
    %53 = math.exp %52 : vector<16x16xf32>
    %cst_21 = arith.constant dense<0.000000e+00> : vector<16xf32>
    %54 = vector.multi_reduction <add>, %53, %cst_21 [1] : vector<16x16xf32> to vector<16xf32>
    %55 = vector.shape_cast %54 : vector<16xf32> to vector<16x1xf32>
    %56 = tpu.reciprocal %55 {approx = true} : vector<16x1xf32> -> vector<16x1xf32>
    %57 = vector.broadcast %56 : vector<16x1xf32> to vector<16x16xf32>
    %58 = arith.mulf %53, %57 : vector<16x16xf32>
    %59 = arith.truncf %58 : vector<16x16xf32> to vector<16x16xbf16>
    %cst_22 = arith.constant dense<0.000000e+00> : vector<16x128xf32>
    %60 = tpu.matmul %59, %43, %cst_22 {dimension_numbers = #tpu.dot_dimension_numbers<[1], [0], [0], [1], [0, 0, 1, 1], [], []>} : vector<16x16xbf16>, vector<16x128xbf16>, vector<16x128xf32> -> vector<16x128xf32>
    %c0_23 = arith.constant 0 : index
    %c128 = arith.constant 128 : index
    %61 = vector.load %arg24[%c0_23, %c128] : memref<32x256xf32, #tpu.memory_space<vmem>>, vector<16x128xf32>
    tpu.vector_store %arg24[%c0_23, %c128], %60 {strides = array<i32>} : memref<32x256xf32, #tpu.memory_space<vmem>>, vector<16x128xf32>,
    %c1 = arith.constant 1 : index
    %c0_24 = arith.constant 0 : index
    %c0_25 = arith.constant 0 : index
    %62 = vector.load %arg3[%c1, %c0_24, %c0_25] : memref<2x1x16xf32, #tpu.memory_space<vmem>>, vector<1x1x16xf32>
    %63 = vector.shape_cast %62 : vector<1x1x16xf32> to vector<1x16xf32>
    %64 = vector.extract_strided_slice %11 {offsets = [16, 0], sizes = [16, 128], strides = [1, 1]} : vector<32x768xf32> to vector<16x128xf32>
    %65 = arith.truncf %64 : vector<16x128xf32> to vector<16x128xbf16>
    %66 = vector.extract_strided_slice %11 {offsets = [16, 128], sizes = [16, 128], strides = [1, 1]} : vector<32x768xf32> to vector<16x128xf32>
    %67 = arith.truncf %66 : vector<16x128xf32> to vector<16x128xbf16>
    %68 = vector.extract_strided_slice %11 {offsets = [16, 256], sizes = [16, 128], strides = [1, 1]} : vector<32x768xf32> to vector<16x128xf32>
    %69 = arith.truncf %68 : vector<16x128xf32> to vector<16x128xbf16>
    %cst_26 = arith.constant dense<0.000000e+00> : vector<16x16xf32>
    %70 = tpu.matmul %65, %67, %cst_26 {dimension_numbers = #tpu.dot_dimension_numbers<[1], [1], [0], [0], [0, 0, 1, 0], [], []>} : vector<16x128xbf16>, vector<16x128xbf16>, vector<16x16xf32> -> vector<16x16xf32>
    %cst_27 = arith.constant 1.250000e-01 : f32
    %71 = vector.broadcast %cst_27 : f32 to vector<16x16xf32>
    %72 = arith.mulf %70, %71 : vector<16x16xf32>
    %73 = vector.broadcast %63 : vector<1x16xf32> to vector<16x16xf32>
    %74 = arith.addf %72, %73 : vector<16x16xf32>
    %cst_28 = arith.constant dense<0xFF800000> : vector<16xf32>
    %75 = vector.multi_reduction <maximumf>, %74, %cst_28 [1] : vector<16x16xf32> to vector<16xf32>
    %76 = vector.shape_cast %75 : vector<16xf32> to vector<16x1xf32>
    %77 = vector.broadcast %76 : vector<16x1xf32> to vector<16x16xf32>
    %78 = arith.subf %74, %77 : vector<16x16xf32>
    %79 = math.exp %78 : vector<16x16xf32>
    %cst_29 = arith.constant dense<0.000000e+00> : vector<16xf32>
    %80 = vector.multi_reduction <add>, %79, %cst_29 [1] : vector<16x16xf32> to vector<16xf32>
    %81 = vector.shape_cast %80 : vector<16xf32> to vector<16x1xf32>
    %82 = tpu.reciprocal %81 {approx = true} : vector<16x1xf32> -> vector<16x1xf32>
    %83 = vector.broadcast %82 : vector<16x1xf32> to vector<16x16xf32>
    %84 = arith.mulf %79, %83 : vector<16x16xf32>
    %85 = arith.truncf %84 : vector<16x16xf32> to vector<16x16xbf16>
    %cst_30 = arith.constant dense<0.000000e+00> : vector<16x128xf32>
    %86 = tpu.matmul %85, %69, %cst_30 {dimension_numbers = #tpu.dot_dimension_numbers<[1], [0], [0], [1], [0, 0, 1, 1], [], []>} : vector<16x16xbf16>, vector<16x128xbf16>, vector<16x128xf32> -> vector<16x128xf32>
    %c16 = arith.constant 16 : index
    %c0_31 = arith.constant 0 : index
    %87 = vector.load %arg24[%c16, %c0_31] : memref<32x256xf32, #tpu.memory_space<vmem>>, vector<16x128xf32>
    tpu.vector_store %arg24[%c16, %c0_31], %86 {strides = array<i32>} : memref<32x256xf32, #tpu.memory_space<vmem>>, vector<16x128xf32>,
    %88 = vector.extract_strided_slice %11 {offsets = [16, 384], sizes = [16, 128], strides = [1, 1]} : vector<32x768xf32> to vector<16x128xf32>
    %89 = arith.truncf %88 : vector<16x128xf32> to vector<16x128xbf16>
    %90 = vector.extract_strided_slice %11 {offsets = [16, 512], sizes = [16, 128], strides = [1, 1]} : vector<32x768xf32> to vector<16x128xf32>
    %91 = arith.truncf %90 : vector<16x128xf32> to vector<16x128xbf16>
    %92 = vector.extract_strided_slice %11 {offsets = [16, 640], sizes = [16, 128], strides = [1, 1]} : vector<32x768xf32> to vector<16x128xf32>
    %93 = arith.truncf %92 : vector<16x128xf32> to vector<16x128xbf16>
    %cst_32 = arith.constant dense<0.000000e+00> : vector<16x16xf32>
    %94 = tpu.matmul %89, %91, %cst_32 {dimension_numbers = #tpu.dot_dimension_numbers<[1], [1], [0], [0], [0, 0, 1, 0], [], []>} : vector<16x128xbf16>, vector<16x128xbf16>, vector<16x16xf32> -> vector<16x16xf32>
    %cst_33 = arith.constant 1.250000e-01 : f32
    %95 = vector.broadcast %cst_33 : f32 to vector<16x16xf32>
    %96 = arith.mulf %94, %95 : vector<16x16xf32>
    %97 = vector.broadcast %63 : vector<1x16xf32> to vector<16x16xf32>
    %98 = arith.addf %96, %97 : vector<16x16xf32>
    %cst_34 = arith.constant dense<0xFF800000> : vector<16xf32>
    %99 = vector.multi_reduction <maximumf>, %98, %cst_34 [1] : vector<16x16xf32> to vector<16xf32>
    %100 = vector.shape_cast %99 : vector<16xf32> to vector<16x1xf32>
    %101 = vector.broadcast %100 : vector<16x1xf32> to vector<16x16xf32>
    %102 = arith.subf %98, %101 : vector<16x16xf32>
    %103 = math.exp %102 : vector<16x16xf32>
    %cst_35 = arith.constant dense<0.000000e+00> : vector<16xf32>
    %104 = vector.multi_reduction <add>, %103, %cst_35 [1] : vector<16x16xf32> to vector<16xf32>
    %105 = vector.shape_cast %104 : vector<16xf32> to vector<16x1xf32>
    %106 = tpu.reciprocal %105 {approx = true} : vector<16x1xf32> -> vector<16x1xf32>
    %107 = vector.broadcast %106 : vector<16x1xf32> to vector<16x16xf32>
    %108 = arith.mulf %103, %107 : vector<16x16xf32>
    %109 = arith.truncf %108 : vector<16x16xf32> to vector<16x16xbf16>
    %cst_36 = arith.constant dense<0.000000e+00> : vector<16x128xf32>
    %110 = tpu.matmul %109, %93, %cst_36 {dimension_numbers = #tpu.dot_dimension_numbers<[1], [0], [0], [1], [0, 0, 1, 1], [], []>} : vector<16x16xbf16>, vector<16x128xbf16>, vector<16x128xf32> -> vector<16x128xf32>
    %c16_37 = arith.constant 16 : index
    %c128_38 = arith.constant 128 : index
    %111 = vector.load %arg24[%c16_37, %c128_38] : memref<32x256xf32, #tpu.memory_space<vmem>>, vector<16x128xf32>
    tpu.vector_store %arg24[%c16_37, %c128_38], %110 {strides = array<i32>} : memref<32x256xf32, #tpu.memory_space<vmem>>, vector<16x128xf32>,
    %c0_39 = arith.constant 0 : index
    %c0_40 = arith.constant 0 : index
    %112 = vector.load %arg24[%c0_39, %c0_40] : memref<32x256xf32, #tpu.memory_space<vmem>>, vector<32x256xf32>
    %113 = arith.truncf %112 : vector<32x256xf32> to vector<32x256xbf16>
    %c0_41 = arith.constant 0 : index
    %c0_42 = arith.constant 0 : index
    %c0_43 = arith.constant 0 : index
    %114 = vector.load %arg8[%c0_41, %c0_42, %c0_43] : memref<1x256x128xbf16, #tpu.memory_space<vmem>>, vector<1x256x128xbf16>
    %115 = vector.shape_cast %114 : vector<1x256x128xbf16> to vector<256x128xbf16>
    %cst_44 = arith.constant dense<0.000000e+00> : vector<32x128xf32>
    %116 = tpu.matmul %113, %115, %cst_44 {dimension_numbers = #tpu.dot_dimension_numbers<[1], [0], [0], [1], [0, 0, 1, 1], [], []>} : vector<32x256xbf16>, vector<256x128xbf16>, vector<32x128xf32> -> vector<32x128xf32>
    %c0_45 = arith.constant 0 : index
    %c0_46 = arith.constant 0 : index
    %c0_47 = arith.constant 0 : index
    %117 = vector.load %arg9[%c0_45, %c0_46, %c0_47] : memref<1x1x128xf32, #tpu.memory_space<vmem>>, vector<1x1x128xf32>
    %118 = vector.shape_cast %117 : vector<1x1x128xf32> to vector<1x128xf32>
    %119 = vector.broadcast %118 : vector<1x128xf32> to vector<32x128xf32>
    %120 = arith.addf %116, %119 : vector<32x128xf32>
    %121 = arith.addf %120, %3 : vector<32x128xf32>
    %c0_48 = arith.constant 0 : index
    %c0_49 = arith.constant 0 : index
    %c0_50 = arith.constant 0 : index
    %122 = vector.load %arg10[%c0_48, %c0_49, %c0_50] : memref<1x1x128xf32, #tpu.memory_space<vmem>>, vector<1x1x128xf32>
    %123 = vector.shape_cast %122 : vector<1x1x128xf32> to vector<1x128xf32>
    %c0_51 = arith.constant 0 : index
    %c0_52 = arith.constant 0 : index
    %c0_53 = arith.constant 0 : index
    %124 = vector.load %arg11[%c0_51, %c0_52, %c0_53] : memref<1x1x128xf32, #tpu.memory_space<vmem>>, vector<1x1x128xf32>
    %125 = vector.shape_cast %124 : vector<1x1x128xf32> to vector<1x128xf32>
    %cst_54 = arith.constant dense<0.000000e+00> : vector<32xf32>
    %126 = vector.multi_reduction <add>, %121, %cst_54 [1] : vector<32x128xf32> to vector<32xf32>
    %127 = vector.shape_cast %126 : vector<32xf32> to vector<32x1xf32>
    %cst_55 = arith.constant 1.280000e+02 : f32
    %128 = vector.broadcast %cst_55 : f32 to vector<32x1xf32>
    %129 = arith.divf %127, %128 : vector<32x1xf32>
    %130 = vector.broadcast %129 : vector<32x1xf32> to vector<32x128xf32>
    %131 = arith.subf %121, %130 : vector<32x128xf32>
    %132 = arith.mulf %131, %131 : vector<32x128xf32>
    %cst_56 = arith.constant dense<0.000000e+00> : vector<32xf32>
    %133 = vector.multi_reduction <add>, %132, %cst_56 [1] : vector<32x128xf32> to vector<32xf32>
    %134 = vector.shape_cast %133 : vector<32xf32> to vector<32x1xf32>
    %cst_57 = arith.constant 1.280000e+02 : f32
    %135 = vector.broadcast %cst_57 : f32 to vector<32x1xf32>
    %136 = arith.divf %134, %135 : vector<32x1xf32>
    %137 = vector.broadcast %129 : vector<32x1xf32> to vector<32x128xf32>
    %138 = arith.subf %121, %137 : vector<32x128xf32>
    %cst_58 = arith.constant 9.99999996E-13 : f32
    %139 = vector.broadcast %cst_58 : f32 to vector<32x1xf32>
    %140 = arith.addf %136, %139 : vector<32x1xf32>
    %141 = math.rsqrt %140 : vector<32x1xf32>
    %142 = vector.broadcast %141 : vector<32x1xf32> to vector<32x128xf32>
    %143 = arith.mulf %138, %142 : vector<32x128xf32>
    %144 = vector.broadcast %123 : vector<1x128xf32> to vector<32x128xf32>
    %145 = arith.mulf %143, %144 : vector<32x128xf32>
    %146 = vector.broadcast %125 : vector<1x128xf32> to vector<32x128xf32>
    %147 = arith.addf %145, %146 : vector<32x128xf32>
    %148 = arith.truncf %147 : vector<32x128xf32> to vector<32x128xbf16>
    %c0_59 = arith.constant 0 : index
    %c0_60 = arith.constant 0 : index
    %c0_61 = arith.constant 0 : index
    %149 = vector.load %arg12[%c0_59, %c0_60, %c0_61] : memref<1x128x256xbf16, #tpu.memory_space<vmem>>, vector<1x128x256xbf16>
    %150 = vector.shape_cast %149 : vector<1x128x256xbf16> to vector<128x256xbf16>
    %cst_62 = arith.constant dense<0.000000e+00> : vector<32x256xf32>
    %151 = tpu.matmul %148, %150, %cst_62 {dimension_numbers = #tpu.dot_dimension_numbers<[1], [0], [0], [1], [0, 0, 1, 1], [], []>} : vector<32x128xbf16>, vector<128x256xbf16>, vector<32x256xf32> -> vector<32x256xf32>
    %c0_63 = arith.constant 0 : index
    %c0_64 = arith.constant 0 : index
    %c0_65 = arith.constant 0 : index
    %152 = vector.load %arg13[%c0_63, %c0_64, %c0_65] : memref<1x1x256xf32, #tpu.memory_space<vmem>>, vector<1x1x256xf32>
    %153 = vector.shape_cast %152 : vector<1x1x256xf32> to vector<1x256xf32>
    %154 = vector.broadcast %153 : vector<1x256xf32> to vector<32x256xf32>
    %155 = arith.addf %151, %154 : vector<32x256xf32>
    %156 = arith.mulf %155, %155 : vector<32x256xf32>
    %157 = arith.mulf %155, %156 : vector<32x256xf32>
    %cst_66 = arith.constant 4.471500e-02 : f32
    %158 = vector.broadcast %cst_66 : f32 to vector<32x256xf32>
    %159 = arith.mulf %158, %157 : vector<32x256xf32>
    %160 = arith.addf %155, %159 : vector<32x256xf32>
    %cst_67 = arith.constant 0.797884583 : f32
    %161 = vector.broadcast %cst_67 : f32 to vector<32x256xf32>
    %162 = arith.mulf %161, %160 : vector<32x256xf32>
    %163 = math.tanh %162 : vector<32x256xf32>
    %cst_68 = arith.constant 1.000000e+00 : f32
    %164 = vector.broadcast %cst_68 : f32 to vector<32x256xf32>
    %165 = arith.addf %164, %163 : vector<32x256xf32>
    %cst_69 = arith.constant 5.000000e-01 : f32
    %166 = vector.broadcast %cst_69 : f32 to vector<32x256xf32>
    %167 = arith.mulf %166, %165 : vector<32x256xf32>
    %168 = arith.mulf %155, %167 : vector<32x256xf32>
    %169 = arith.truncf %168 : vector<32x256xf32> to vector<32x256xbf16>
    %c0_70 = arith.constant 0 : index
    %c0_71 = arith.constant 0 : index
    %c0_72 = arith.constant 0 : index
    %170 = vector.load %arg14[%c0_70, %c0_71, %c0_72] : memref<1x256x128xbf16, #tpu.memory_space<vmem>>, vector<1x256x128xbf16>
    %171 = vector.shape_cast %170 : vector<1x256x128xbf16> to vector<256x128xbf16>
    %cst_73 = arith.constant dense<0.000000e+00> : vector<32x128xf32>
    %172 = tpu.matmul %169, %171, %cst_73 {dimension_numbers = #tpu.dot_dimension_numbers<[1], [0], [0], [1], [0, 0, 1, 1], [], []>} : vector<32x256xbf16>, vector<256x128xbf16>, vector<32x128xf32> -> vector<32x128xf32>
    %c0_74 = arith.constant 0 : index
    %c0_75 = arith.constant 0 : index
    %c0_76 = arith.constant 0 : index
    %173 = vector.load %arg15[%c0_74, %c0_75, %c0_76] : memref<1x1x128xf32, #tpu.memory_space<vmem>>, vector<1x1x128xf32>
    %174 = vector.shape_cast %173 : vector<1x1x128xf32> to vector<1x128xf32>
    %175 = vector.broadcast %174 : vector<1x128xf32> to vector<32x128xf32>
    %176 = arith.addf %172, %175 : vector<32x128xf32>
    %177 = arith.addf %176, %147 : vector<32x128xf32>
    %c0_77 = arith.constant 0 : index
    %c0_78 = arith.constant 0 : index
    %c0_79 = arith.constant 0 : index
    %178 = vector.load %arg16[%c0_77, %c0_78, %c0_79] : memref<1x1x128xf32, #tpu.memory_space<vmem>>, vector<1x1x128xf32>
    %179 = vector.shape_cast %178 : vector<1x1x128xf32> to vector<1x128xf32>
    %c0_80 = arith.constant 0 : index
    %c0_81 = arith.constant 0 : index
    %c0_82 = arith.constant 0 : index
    %180 = vector.load %arg17[%c0_80, %c0_81, %c0_82] : memref<1x1x128xf32, #tpu.memory_space<vmem>>, vector<1x1x128xf32>
    %181 = vector.shape_cast %180 : vector<1x1x128xf32> to vector<1x128xf32>
    %cst_83 = arith.constant dense<0.000000e+00> : vector<32xf32>
    %182 = vector.multi_reduction <add>, %177, %cst_83 [1] : vector<32x128xf32> to vector<32xf32>
    %183 = vector.shape_cast %182 : vector<32xf32> to vector<32x1xf32>
    %cst_84 = arith.constant 1.280000e+02 : f32
    %184 = vector.broadcast %cst_84 : f32 to vector<32x1xf32>
    %185 = arith.divf %183, %184 : vector<32x1xf32>
    %186 = vector.broadcast %185 : vector<32x1xf32> to vector<32x128xf32>
    %187 = arith.subf %177, %186 : vector<32x128xf32>
    %188 = arith.mulf %187, %187 : vector<32x128xf32>
    %cst_85 = arith.constant dense<0.000000e+00> : vector<32xf32>
    %189 = vector.multi_reduction <add>, %188, %cst_85 [1] : vector<32x128xf32> to vector<32xf32>
    %190 = vector.shape_cast %189 : vector<32xf32> to vector<32x1xf32>
    %cst_86 = arith.constant 1.280000e+02 : f32
    %191 = vector.broadcast %cst_86 : f32 to vector<32x1xf32>
    %192 = arith.divf %190, %191 : vector<32x1xf32>
    %193 = vector.broadcast %185 : vector<32x1xf32> to vector<32x128xf32>
    %194 = arith.subf %177, %193 : vector<32x128xf32>
    %cst_87 = arith.constant 9.99999996E-13 : f32
    %195 = vector.broadcast %cst_87 : f32 to vector<32x1xf32>
    %196 = arith.addf %192, %195 : vector<32x1xf32>
    %197 = math.rsqrt %196 : vector<32x1xf32>
    %198 = vector.broadcast %197 : vector<32x1xf32> to vector<32x128xf32>
    %199 = arith.mulf %194, %198 : vector<32x128xf32>
    %200 = vector.broadcast %179 : vector<1x128xf32> to vector<32x128xf32>
    %201 = arith.mulf %199, %200 : vector<32x128xf32>
    %202 = vector.broadcast %181 : vector<1x128xf32> to vector<32x128xf32>
    %203 = arith.addf %201, %202 : vector<32x128xf32>
    %c0_88 = arith.constant 0 : index
    %c0_89 = arith.constant 0 : index
    %204 = vector.load %arg23[%c0_88, %c0_89] : memref<32x128xf32, #tpu.memory_space<vmem>>, vector<32x128xf32>
    tpu.vector_store %arg23[%c0_88, %c0_89], %203 {strides = array<i32>} : memref<32x128xf32, #tpu.memory_space<vmem>>, vector<32x128xf32>,
    %c1_i32 = arith.constant 1 : i32
    %205 = arith.cmpi eq, %arg1, %c1_i32 : i32
    %206 = arith.extui %205 : i1 to i32
    %c0_i32_90 = arith.constant 0 : i32
    %207 = arith.cmpi ne, %206, %c0_i32_90 : i32
    scf.if %207 {
      %c0_91 = arith.constant 0 : index
      %c0_92 = arith.constant 0 : index
      %208 = vector.load %arg23[%c0_91, %c0_92] : memref<32x128xf32, #tpu.memory_space<vmem>>, vector<1x128xf32>
      %c16_93 = arith.constant 16 : index
      %c0_94 = arith.constant 0 : index
      %209 = vector.load %arg23[%c16_93, %c0_94] : memref<32x128xf32, #tpu.memory_space<vmem>>, vector<1x128xf32>
      %210 = tpu.concatenate %208, %209 in 0 : vector<1x128xf32>, vector<1x128xf32> -> vector<2x128xf32>
      %211 = arith.truncf %210 : vector<2x128xf32> to vector<2x128xbf16>
      %c0_95 = arith.constant 0 : index
      %c0_96 = arith.constant 0 : index
      %212 = vector.load %arg18[%c0_95, %c0_96] : memref<128x128xbf16, #tpu.memory_space<vmem>>, vector<128x128xbf16>
      %cst_97 = arith.constant dense<0.000000e+00> : vector<2x128xf32>
      %213 = tpu.matmul %211, %212, %cst_97 {dimension_numbers = #tpu.dot_dimension_numbers<[1], [0], [0], [1], [0, 0, 1, 1], [], []>} : vector<2x128xbf16>, vector<128x128xbf16>, vector<2x128xf32> -> vector<2x128xf32>
      %c0_98 = arith.constant 0 : index
      %c0_99 = arith.constant 0 : index
      %214 = vector.load %arg19[%c0_98, %c0_99] : memref<1x128xf32, #tpu.memory_space<vmem>>, vector<1x128xf32>
      %215 = vector.broadcast %214 : vector<1x128xf32> to vector<2x128xf32>
      %216 = arith.addf %213, %215 : vector<2x128xf32>
      %217 = math.tanh %216 : vector<2x128xf32>
      %218 = arith.truncf %217 : vector<2x128xf32> to vector<2x128xbf16>
      %c0_100 = arith.constant 0 : index
      %c0_101 = arith.constant 0 : index
      %219 = vector.load %arg20[%c0_100, %c0_101] : memref<128x128xbf16, #tpu.memory_space<vmem>>, vector<128x128xbf16>
      %cst_102 = arith.constant dense<0.000000e+00> : vector<2x128xf32>
      %220 = tpu.matmul %218, %219, %cst_102 {dimension_numbers = #tpu.dot_dimension_numbers<[1], [0], [0], [1], [0, 0, 1, 1], [], []>} : vector<2x128xbf16>, vector<128x128xbf16>, vector<2x128xf32> -> vector<2x128xf32>
      %c0_103 = arith.constant 0 : index
      %c0_104 = arith.constant 0 : index
      %221 = vector.load %arg21[%c0_103, %c0_104] : memref<1x128xf32, #tpu.memory_space<vmem>>, vector<1x128xf32>
      %222 = vector.broadcast %221 : vector<1x128xf32> to vector<2x128xf32>
      %223 = arith.addf %220, %222 : vector<2x128xf32>
      %c0_105 = arith.constant 0 : index
      %c0_106 = arith.constant 0 : index
      %224 = vector.load %arg22[%c0_105, %c0_106] : memref<2x128xf32, #tpu.memory_space<vmem>>, vector<2x128xf32>
      tpu.vector_store %arg22[%c0_105, %c0_106], %223 {strides = array<i32>} : memref<2x128xf32, #tpu.memory_space<vmem>>, vector<2x128xf32>,
    } else {
    }
    return
  }
  func.func @transform_0(%arg0: i32, %arg1: i32) -> (i32, i32, i32) {
    %c0_i32 = arith.constant 0 : i32
    %c0_i32_0 = arith.constant 0 : i32
    %c0_i32_1 = arith.constant 0 : i32
    return %arg0, %c0_i32, %c0_i32_0 : i32, i32, i32
  }
  func.func @transform_1(%arg0: i32, %arg1: i32) -> (i32, i32, i32) {
    %c0_i32 = arith.constant 0 : i32
    %c0_i32_0 = arith.constant 0 : i32
    %c0_i32_1 = arith.constant 0 : i32
    return %arg0, %c0_i32, %c0_i32_0 : i32, i32, i32
  }
  func.func @transform_2(%arg0: i32, %arg1: i32) -> (i32, i32) {
    %c0_i32 = arith.constant 0 : i32
    %c0_i32_0 = arith.constant 0 : i32
    %c0_i32_1 = arith.constant 0 : i32
    return %c0_i32, %c0_i32_0 : i32, i32
  }
  func.func @transform_3(%arg0: i32, %arg1: i32) -> (i32, i32) {
    %c0_i32 = arith.constant 0 : i32
    %c0_i32_0 = arith.constant 0 : i32
    %c0_i32_1 = arith.constant 0 : i32
    return %c0_i32, %c0_i32_0 : i32, i32
  }
  func.func @transform_4(%arg0: i32, %arg1: i32) -> (i32, i32, i32) {
    %c0_i32 = arith.constant 0 : i32
    %c0_i32_0 = arith.constant 0 : i32
    %c0_i32_1 = arith.constant 0 : i32
    return %arg1, %c0_i32, %c0_i32_0 : i32, i32, i32
  }
  func.func @transform_5(%arg0: i32, %arg1: i32) -> (i32, i32, i32) {
    %c0_i32 = arith.constant 0 : i32
    %c0_i32_0 = arith.constant 0 : i32
    %c0_i32_1 = arith.constant 0 : i32
    return %arg1, %c0_i32, %c0_i32_0 : i32, i32, i32
  }
  func.func @transform_6(%arg0: i32, %arg1: i32) -> (i32, i32, i32) {
    %c0_i32 = arith.constant 0 : i32
    %c0_i32_0 = arith.constant 0 : i32
    %c0_i32_1 = arith.constant 0 : i32
    return %arg1, %c0_i32, %c0_i32_0 : i32, i32, i32
  }
  func.func @transform_7(%arg0: i32, %arg1: i32) -> (i32, i32, i32) {
    %c0_i32 = arith.constant 0 : i32
    %c0_i32_0 = arith.constant 0 : i32
    %c0_i32_1 = arith.constant 0 : i32
    return %arg1, %c0_i32, %c0_i32_0 : i32, i32, i32
  }
  func.func @transform_8(%arg0: i32, %arg1: i32) -> (i32, i32, i32) {
    %c0_i32 = arith.constant 0 : i32
    %c0_i32_0 = arith.constant 0 : i32
    %c0_i32_1 = arith.constant 0 : i32
    return %arg1, %c0_i32, %c0_i32_0 : i32, i32, i32
  }
  func.func @transform_9(%arg0: i32, %arg1: i32) -> (i32, i32, i32) {
    %c0_i32 = arith.constant 0 : i32
    %c0_i32_0 = arith.constant 0 : i32
    %c0_i32_1 = arith.constant 0 : i32
    return %arg1, %c0_i32, %c0_i32_0 : i32, i32, i32
  }
  func.func @transform_10(%arg0: i32, %arg1: i32) -> (i32, i32, i32) {
    %c0_i32 = arith.constant 0 : i32
    %c0_i32_0 = arith.constant 0 : i32
    %c0_i32_1 = arith.constant 0 : i32
    return %arg1, %c0_i32, %c0_i32_0 : i32, i32, i32
  }
  func.func @transform_11(%arg0: i32, %arg1: i32) -> (i32, i32, i32) {
    %c0_i32 = arith.constant 0 : i32
    %c0_i32_0 = arith.constant 0 : i32
    %c0_i32_1 = arith.constant 0 : i32
    return %arg1, %c0_i32, %c0_i32_0 : i32, i32, i32
  }
  func.func @transform_12(%arg0: i32, %arg1: i32) -> (i32, i32, i32) {
    %c0_i32 = arith.constant 0 : i32
    %c0_i32_0 = arith.constant 0 : i32
    %c0_i32_1 = arith.constant 0 : i32
    return %arg1, %c0_i32, %c0_i32_0 : i32, i32, i32
  }
  func.func @transform_13(%arg0: i32, %arg1: i32) -> (i32, i32, i32) {
    %c0_i32 = arith.constant 0 : i32
    %c0_i32_0 = arith.constant 0 : i32
    %c0_i32_1 = arith.constant 0 : i32
    return %arg1, %c0_i32, %c0_i32_0 : i32, i32, i32
  }
  func.func @transform_14(%arg0: i32, %arg1: i32) -> (i32, i32, i32) {
    %c0_i32 = arith.constant 0 : i32
    %c0_i32_0 = arith.constant 0 : i32
    %c0_i32_1 = arith.constant 0 : i32
    return %arg1, %c0_i32, %c0_i32_0 : i32, i32, i32
  }
  func.func @transform_15(%arg0: i32, %arg1: i32) -> (i32, i32, i32) {
    %c0_i32 = arith.constant 0 : i32
    %c0_i32_0 = arith.constant 0 : i32
    %c0_i32_1 = arith.constant 0 : i32
    return %arg1, %c0_i32, %c0_i32_0 : i32, i32, i32
  }
  func.func @transform_16(%arg0: i32, %arg1: i32) -> (i32, i32) {
    %c0_i32 = arith.constant 0 : i32
    %c0_i32_0 = arith.constant 0 : i32
    %c0_i32_1 = arith.constant 0 : i32
    return %c0_i32, %c0_i32_0 : i32, i32
  }
  func.func @transform_17(%arg0: i32, %arg1: i32) -> (i32, i32) {
    %c0_i32 = arith.constant 0 : i32
    %c0_i32_0 = arith.constant 0 : i32
    %c0_i32_1 = arith.constant 0 : i32
    return %c0_i32, %c0_i32_0 : i32, i32
  }
  func.func @transform_18(%arg0: i32, %arg1: i32) -> (i32, i32) {
    %c0_i32 = arith.constant 0 : i32
    %c0_i32_0 = arith.constant 0 : i32
    %c0_i32_1 = arith.constant 0 : i32
    return %c0_i32, %c0_i32_0 : i32, i32
  }
  func.func @transform_19(%arg0: i32, %arg1: i32) -> (i32, i32) {
    %c0_i32 = arith.constant 0 : i32
    %c0_i32_0 = arith.constant 0 : i32
    %c0_i32_1 = arith.constant 0 : i32
    return %c0_i32, %c0_i32_0 : i32, i32
  }
  func.func @transform_20(%arg0: i32, %arg1: i32) -> (i32, i32) {
    %c0_i32 = arith.constant 0 : i32
    %c0_i32_0 = arith.constant 0 : i32
    return %arg0, %c0_i32 : i32, i32
  }
}

</mosaic_0001>

<bundles_post_ra>
// kernel: bert_class_forward.1
= control target key start
LH: loop header
LB: loop body
LE: loop exit
PB: predicated region body
PF: predicated region fallthrough
CT: control target
= control target key end

     0   :  { %s4616_s0 = inlined_call_operand.vmem [shape: bf16[2,16,128], index: 0, kind: input, shape index: {}]   ;;  %s4617_s1 = inlined_call_operand.vmem [shape: f32[2,1,16], index: 1, kind: input, shape index: {}]   ;;  %s4618_s2 = inlined_call_operand.vmem [shape: f32[1,128], index: 2, kind: input, shape index: {}]   ;;  %s4619_s3 = inlined_call_operand.vmem [shape: f32[1,128], index: 3, kind: input, shape index: {}]   ;;  %s4620_s4 = inlined_call_operand.hbm [shape: bf16[2,128,768], index: 4, kind: input, shape index: {}]   ;;  %s4621_s5 = inlined_call_operand.vmem [shape: f32[2,1,768], index: 5, kind: input, shape index: {}]   ;;  %s4622_s6 = inlined_call_operand.vmem [shape: bf16[2,256,128], index: 6, kind: input, shape index: {}]   ;;  %s4623_s7 = inlined_call_operand.vmem [shape: f32[2,1,128], index: 7, kind: input, shape index: {}]   ;;  %s4624_s8 = inlined_call_operand.vmem [shape: f32[2,1,128], index: 8, kind: input, shape index: {}]   ;;  %s4625_s9 = inlined_call_operand.vmem [shape: f32[2,1,128], index: 9, kind: input, shape index: {}]   ;;  %s4626_s10 = inlined_call_operand.vmem [shape: bf16[2,128,256], index: 10, kind: input, shape index: {}]   ;;  %s4627_s11 = inlined_call_operand.vmem [shape: f32[2,1,256], index: 11, kind: input, shape index: {}]   ;;  %s4628_s12 = inlined_call_operand.vmem [shape: bf16[2,256,128], index: 12, kind: input, shape index: {}]   ;;  %s4629_s13 = inlined_call_operand.vmem [shape: f32[2,1,128], index: 13, kind: input, shape index: {}]   ;;  %s4630_s14 = inlined_call_operand.vmem [shape: f32[2,1,128], index: 14, kind: input, shape index: {}]   ;;  %s4631_s15 = inlined_call_operand.vmem [shape: f32[2,1,128], index: 15, kind: input, shape index: {}]   ;;  %s4632_s16 = inlined_call_operand.vmem [shape: bf16[128,128], index: 16, kind: input, shape index: {}]   ;;  %s4633_s17 = inlined_call_operand.vmem [shape: f32[1,128], index: 17, kind: input, shape index: {}]   ;;  %s4634_s18 = inlined_call_operand.vmem [shape: bf16[128,128], index: 18, kind: input, shape index: {}]   ;;  %s4635_s19 = inlined_call_operand.vmem [shape: f32[1,128], index: 19, kind: input, shape index: {}]   ;;  %s4636_s20 = inlined_call_operand.hbm [shape: f32[2,128], index: 20, kind: output, shape index: {}]  }
   0x1   :  { %4650 = sst [smem:[#allocation16_spill]] %s4616_s0 }
   0x2   :  { %4651 = sst [smem:[#allocation17_spill]] %s4617_s1 }
   0x3   :  { %4652 = sst [smem:[#allocation18_spill]] %s4618_s2 }
   0x4   :  { %4653 = sst [smem:[#allocation19_spill]] %s4619_s3 }
   0x5   :  { %4654 = sst [smem:[#allocation20_spill]] %s4620_s4 }
   0x6   :  { %4655 = sst [smem:[#allocation21_spill]] %s4621_s5 }
   0x7   :  { %4656 = sst [smem:[#allocation22_spill]] %s4622_s6 }
   0x8   :  { %4657 = sst [smem:[#allocation23_spill]] %s4626_s10 }
   0x9   :  { %4658 = sst [smem:[#allocation24_spill]] %s4632_s16 }
   0xa   :  { %4659 = sst [smem:[#allocation25_spill]] %s4633_s17 }
   0xb   :  { %4660 = sst [smem:[#allocation26_spill]] %s4634_s18 }
   0xc   :  { %4661 = sst [smem:[#allocation27_spill]] %s4635_s19 }
   0xd   :  { %4662 = sst [smem:[#allocation28_spill]] %s4636_s20 }
   0xe   :  { %25 = vsyncpa [#allocation5], 0 }
   0xf   :  { %27 = vsyncpa [#allocation5 + $0x1], 0 }
  0x10   :  { %28 = vsyncpa [#allocation6], 0  ;;  %s4012_s1 = smov 0   ;;  %s4014_s22 = smov 0  }
  0x11   :  { %s4016_s23 = smov 0   ;;  %s4018_s24 = smov 0  }
  0x12   :  { %s4020_s2 = smov 0   ;;  %s4022_s25 = smov 0  }
  0x13 LB: > { %4663 = sst [smem:[#allocation10_spill]] %s3880_s22  ;;  %s4642_s3 = sadd.s32 4294967295, %s3896_s25   ;;  %s3896_s25 = sphi %s4022_s25, %s34_s25   ;;  %s3892_s2 = sphi %s4020_s2, %s4698_s2   ;;  %s3888_s24 = sphi %s4018_s24, %s4697_s24   ;;  %s3884_s23 = sphi %s4016_s23, %s4696_s23   ;;  %s3880_s22 = sphi %s4014_s22, %s4695_s22   ;;  %s3876_s1 = sphi %s4012_s1, %s4694_s1  }
  0x14   : > { %4664 = sst [smem:[#allocation11_spill]] %s3884_s23  ;;  %s43_s26 = sadd.s32 1, %s3892_s2 }
  0x15   : > { %4665 = sst [smem:[#allocation12_spill]] %s3892_s2  ;;  %p44_p0 = scmp.ge.s32.totalorder %s43_s26, 2 }
  0x16   : > { %4666 = sst [smem:[#allocation13_spill]] %s3896_s25  ;;  %s147_s27 = sadd.s32 1, %s3884_s23 }
  0x17   : > { %p154_p1 = scmp.ne.s32.totalorder %s3884_s23, %s3880_s22  ;;  %p155_p2 = scmp.eq.s32.totalorder %s3896_s25, 0 }
  0x18   : > { %s4700_s26 = smov (%p44_p0, %s43_s26), 0  ;;  %p160_p4 = scmp.ne.s32.totalorder %s3880_s22, %s3876_s1 }
  0x19   : > { %4667 = sst [smem:[#allocation14_spill]] %s4700_s26  ;;  %p156_p3 = por %p155_p2, %p154_p1 }
  0x1a   : > { %s144_s28 = ssub.s32 %s3892_s2, %s4700_s26  ;;  %p161_p5 = scmp.eq.s32.totalorder %s4642_s3, 0 }
  0x1b   : > { %p145_p6 = scmp.eq.s32.totalorder %s144_s28, 0  ;;  %p3509_p8 = scmp.lt.s32.totalorder %s3896_s25, 2 }
  0x1c   : > { %p4053_p7 = por %p161_p5, %p160_p4  ;;  %s616_s30 = sand.u32 1, %s3884_s23  }
  0x1d   : > { %s4059_s29 = scalar_select %p145_p6, %s3884_s23, %s147_s27  }
  0x1e   : > { %s3496_s0 = smul.u32 6144, %s3892_s2  ;;  %s4670_s17 = sld [smem:[#allocation20_spill]] }
  0x1f   : > { %4669 = sst [smem:[#allocation15_spill]] %s4059_s29  ;;  %s3495_s21 = smul.u32 384, %s616_s30 }
  0x20   : > { %p4068_p9 = pnand %p3509_p8, %p156_p3  ;;  %s4074_s3 = scalar_lea.sflag [#allocation5], %s616_s30 }
  0x21   : > { %s620_s27 = scalar_lea.vmem [#allocation4], %s3495_s21 }
  0x22   : > { %s627_s28 = sshll.u32 %s620_s27, 4  ;;  %p3788_p11 = pneg %p4068_p9  ;;  %s4072_s28 = int_to_ptr.vmem [resolvable:$true] %s627_s28 }
  0x24   : > { %s4066_s18 = scalar_lea.hbm %s4670_s17, %s3496_s0  ;;  %s3791_s0 = scalar_lea.hbm %s4670_s17, 12288 }
  0x25   : > { %s3786_s26 = scalar_lea.hbm %s4066_s18, 6144  ;;  %p3792_p0 = scmp.lt.u32.totalorder %s4066_s18, %s4670_s17 }
  0x26   : > { %p3787_p10 = scmp.ne.s32.totalorder %s4066_s18, %s3786_s26  ;;  %p3793_p1 = scmp.lt.u32.totalorder %s3791_s0, %s3786_s26 }
  0x27   : > { %p3795_p3 = scmp.lt.u32.totalorder %s3786_s26, %s4066_s18 }
  0x28   : > { %p3789_p12 = pnand %p3788_p11, %p3787_p10  ;;  %p3794_p2 = por %p3793_p1, %p3792_p0 }
  0x2a   : > { %p3790_p13 = pneg %p3789_p12  ;;  %p3796_p4 = por %p3795_p3, %p3794_p2 }
  0x2c   : > { %p3797_p5 = pnand %p3796_p4, %p3790_p13 }
  0x2e   : > { %3800 = shalt.err (!%p3797_p5)
}
  0x2f   : > { %s3801_s30 = scalar_lea.vmem %s4072_s28, 6144  ;;  %s3898_s21 = smov [#allocation4]  }
  0x30   : > { %p3802_p6 = scmp.ne.s32.totalorder %s4072_s28, %s3801_s30  ;;  %s3806_s27 = sshll.u32 %s3898_s21, 4  ;;  %s3807_s27 = int_to_ptr.vmem [resolvable:$false] %s3806_s27 }
  0x31   : > { %s3808_s2 = scalar_lea.vmem %s3807_s27, 12288  ;;  %p3809_p12 = scmp.lt.s32.totalorder %s4072_s28, %s3807_s27 }
  0x32   : > { %p3804_p8 = pnand %p3802_p6, %p3788_p11  ;;  %p3810_p0 = scmp.lt.s32.totalorder %s3808_s2, %s3801_s30 }
  0x34   : > { %p3805_p10 = pneg %p3804_p8  ;;  %p3811_p1 = por %p3810_p0, %p3809_p12 }
  0x36   : > { %p3812_p2 = pnand %p3811_p1, %p3805_p10 }
  0x38   : > { %3815 = shalt.err (!%p3812_p2)
}
  0x39   : > { %s3899_s26 = smov 384   ;;  %s3900_s29 = smov 24  }
  0x3a   : > { %3508 = dma.hbm_to_vmem [thread:$0]  (!%p4068_p9), %s4066_s18, 6144, %s4072_s28, %s4074_s3, %s3899_s26, %s3899_s26, %s3900_s29  }
  0x3b   : > { %p3146_p11 = scmp.ge.s32.totalorder %s3896_s25, 1  ;;  %p709_p13 = scmp.lt.s32.totalorder %s3896_s25, 3 }
  0x3d   : > { %p710_p3 = pnand %p3146_p11, %p709_p13 }
  0x3e   : > { %s715_s19 = sand.u32 (!%p710_p3), 1, %s3880_s22  }
  0x3f   : > { %713 = sbr.rel (%p710_p3) target bundleno = 3782 (0xec6), region = 100  ;;  %s716_s0 = scalar_lea.sflag (!%p710_p3), [#allocation5], %s715_s19 }
  0x40   : > { %s3497_s20 = smul.u32 (!%p710_p3), 384, %s715_s19 }
  0x42   : > { %s4105_s30 = scalar_lea.vmem (!%p710_p3), [#allocation4], %s3497_s20 }
  0x46   : > { %3867 = dma.done.wait (%p4053_p7), %s716_s0, 6144  }
  0x47   : > { %3869 = vsyncadd (%p4053_p7), %s716_s0, 4294961152  ;;  %p834_p4 = scmp.lt.s32.totalorder %s3888_s24, 1  ;;  %s4672_s6 = sld [smem:[#allocation22_spill]] }
  0x48   : > { %s4673_s5 = sld [smem:[#allocation21_spill]]  ;;  %s4674_s10 = sld [smem:[#allocation23_spill]] }
  0x49   : > { %s4113_s18 = scalar_select %p834_p4, %s3888_s24, 1 }
  0x4a   : > { %p3154_p7 = scmp.ne.s32.totalorder %s3888_s24, 0 }
  0x4b   : > { %s3498_s3 = smul.u32 6, %s4113_s18  ;;  %s3289_s1 = sshll.u32 %s4113_s18, 7 }
  0x4c   : > { %s3151_s27 = sshll.u32 %s4113_s18, 1  ;;  %s4148_s29 = scalar_lea.vmem %s4628_s12, %s3289_s1 }
  0x4d   : > { %s4120_s4 = scalar_lea.vmem %s4672_s6, %s3289_s1  ;;  %s4153_s17 = scalar_lea.vmem %s4627_s11, %s3151_s27 }
  0x4e   : > { %s4129_s20 = scalar_lea.vmem %s4673_s5, %s3498_s3  ;;  %s4142_s6 = scalar_lea.vmem %s4674_s10, %s3289_s1 }
  0x4f   : > { %s868_s22 = scalar_lea.vmem %s4629_s13, %s4113_s18  ;;  %s871_s28 = scalar_lea.vmem %s4630_s14, %s4113_s18 }
  0x50   : > { %s874_s10 = scalar_lea.vmem %s4631_s15, %s4113_s18  ;;  %879 = sbr.rel (%p3154_p7) target bundleno = 410 (0x19a), region = 108 }
  0x51   : > { %s4675_s2 = sld [smem:[#allocation16_spill]] (!%p3154_p7)  ;;  %s4677_s23 = sld [smem:[#allocation18_spill]] (!%p3154_p7) }
  0x52   : > { %s4678_s21 = sld [smem:[#allocation19_spill]] (!%p3154_p7) }
  0x57   : > { %s4676_s3 = smov %s4675_s2  ;;  %v3293_v0 = vld [vmem:[%s4675_s2] sm:$0xff]  }
  0x58   : > { %v3300_v1 = vld [vmem:[%s4676_s3 + $0x8] sm:$0xff]   ;;  %v3294_v2 = vunpack.c.l.bf16 %v3293_v0  ;;  %v3295_v4 = vunpack.c.h.bf16 %v3293_v0  ;;  %v3155_v35 = vld [vmem:[%s4677_s23] ss:$0 sm:$0xff] }
  0x59   : > { %v3298_v3 = vunpack.c.l.bf16 %v3300_v1  ;;  %v3299_v5 = vunpack.c.h.bf16 %v3300_v1  ;;  %v3156_v37 = vld [vmem:[%s4678_s21] ss:$0 sm:$0xff] }
  0x5a   : > { %890 = vadd.xlane.f32.xlu0 %v3294_v2 }
  0x5b   : > { %894 = vadd.xlane.f32.xlu1 %v3298_v3 }
  0x5e   : > { %892 = vadd.xlane.f32.xlu0 %v3295_v4 }
  0x5f   : > { %896 = vadd.xlane.f32.xlu1 %v3299_v5 }
  0xe7   : > { %v891_v6 = vpop.xlane.xlu0 %890 }
  0xe8   : > { %v895_v7 = vpop.xlane.xlu1 %894  ;;  %v899_v8 = vmul.f32 0.0078125, %v891_v6 }
  0xe9   : > { %v901_v9 = vmul.f32 0.0078125, %v895_v7 }
  0xea   : > { %v903_v10 = vsub.f32 %v3294_v2, %v899_v8 }
  0xeb   : > { %v905_v11 = vsub.f32 %v3298_v3, %v901_v9  ;;  %v893_v12 = vpop.xlane.xlu0 %892 }
  0xec   : > { %v897_v13 = vpop.xlane.xlu1 %896  ;;  %v900_v14 = vmul.f32 0.0078125, %v893_v12  ;;  %v907_v15 = vmul.f32 %v903_v10, %v903_v10 }
  0xed   : > { %v902_v16 = vmul.f32 0.0078125, %v897_v13  ;;  %v909_v19 = vmul.f32 %v905_v11, %v905_v11 }
  0xee   : > { %v904_v17 = vsub.f32 %v3295_v4, %v900_v14  ;;  %911 = vadd.xlane.f32.xlu0 %v907_v15 }
  0xef   : > { %v906_v18 = vsub.f32 %v3299_v5, %v902_v16 }
  0xf0   : > { %v908_v20 = vmul.f32 %v904_v17, %v904_v17 }
  0xf1   : > { %v910_v21 = vmul.f32 %v906_v18, %v906_v18 }
  0xf2   : > { %915 = vadd.xlane.f32.xlu0 %v909_v19  ;;  %913 = vadd.xlane.f32.xlu1 %v908_v20 }
  0xf6   : > { %917 = vadd.xlane.f32.xlu1 %v910_v21 }
 0x17b   : > { %v912_v22 = vpop.xlane.xlu0 %911 }
 0x17c   : > { %v919_v23 = vmul.f32 0.0078125, %v912_v22 }
 0x17e   : > { %v923_v24 = vadd.f32 1e-12, %v919_v23 }
 0x17f   : > { %v914_v25 = vpop.xlane.xlu1 %913  ;;  %v916_v26 = vpop.xlane.xlu0 %915 }
 0x180   : > { %3568 = vrsqrt.f32 %v923_v24  ;;  %v920_v27 = vmul.f32 0.0078125, %v914_v25  ;;  %v921_v28 = vmul.f32 0.0078125, %v916_v26 }
 0x182   : > { %v924_v29 = vadd.f32 1e-12, %v920_v27  ;;  %v925_v30 = vadd.f32 1e-12, %v921_v28 }
 0x183   : > { %v918_v31 = vpop.xlane.xlu1 %917 }
 0x184   : > { %3570 = vrsqrt.f32 %v924_v29  ;;  %v922_v32 = vmul.f32 0.0078125, %v918_v31 }
 0x185   : > { %3572 = vrsqrt.f32 %v925_v30 }
 0x186   : > { %v926_v33 = vadd.f32 1e-12, %v922_v32 }
 0x188   : > { %3574 = vrsqrt.f32 %v926_v33 }
 0x18a   : > { %v3569_v34 = vpop.eup %3568 }
 0x18b   : > { %v931_v36 = vmul.f32 %v3569_v34, %v903_v10 }
 0x18d   : > { %v941_v38 = vmul.f32 %v3155_v35, %v931_v36 }
 0x18e   : > { %v3571_v39 = vpop.eup %3570 }
 0x18f   : > { %v3573_v40 = vpop.eup %3572  ;;  %v951_v41 = vadd.f32 %v3156_v37, %v941_v38  ;;  %v932_v42 = vmul.f32 %v3571_v39, %v904_v17 }
 0x190   : > { %v933_v43 = vmul.f32 %v3573_v40, %v905_v11 }
 0x191   : > { %955 = vst [vmem:[#allocation2] sm:$0xff] %v951_v41  ;;  %v942_v44 = vmul.f32 %v3155_v35, %v932_v42 }
 0x192   : > { %v3575_v45 = vpop.eup %3574  ;;  %v943_v46 = vmul.f32 %v3155_v35, %v933_v43 }
 0x193   : > { %v952_v47 = vadd.f32 %v3156_v37, %v942_v44  ;;  %v934_v48 = vmul.f32 %v3575_v45, %v906_v18 }
 0x194   : > { %v953_v49 = vadd.f32 %v3156_v37, %v943_v46 }
 0x195   : > { %956 = vst [vmem:[#allocation2 + $0x8] sm:$0xff] %v952_v47  ;;  %v944_v50 = vmul.f32 %v3155_v35, %v934_v48 }
 0x196   : > { %957 = vst [vmem:[#allocation2 + $0x10] sm:$0xff] %v953_v49 }
 0x197   : > { %v954_v51 = vadd.f32 %v3156_v37, %v944_v50 }
 0x199   : > { %958 = vst [vmem:[#allocation2 + $0x18] sm:$0xff] %v954_v51 }
 0x19a PF: > { %v3576_v52 = vld [vmem:[%s4105_s30 + $0x4] ss:$24 sps:$4 sm:$0xff]   ;;  %v3578_v53 = vld [vmem:[%s4105_s30] ss:$24 sps:$4 sm:$0xff]   ;;  %v3901_v54 = vmov 0   ;;  %v3902_v43 = vmov 0.0   ;;  %v1015_v44 = vlaneseq  ;;  %s4681_s5 = scalar_lea.vmem %s4623_s7, %s4113_s18  ;;  %s4682_s0 = scalar_lea.vmem %s4624_s8, %s4113_s18 }
 0x19b   : > { %1317 = vmatprep.mubr.bf16.mxu0 %v3901_v54  ;;  %1370 = vmatprep.mubr.bf16.mxu1 %v3901_v54  ;;  %v3579_v55 = vld [vmem:[%s4105_s30 + $0x34] ss:$24 sps:$4 sm:$0xff]   ;;  %v3581_v56 = vld [vmem:[%s4105_s30 + $0x30] ss:$24 sps:$4 sm:$0xff]   ;;  %v3582_v57 = vld [vmem:[%s4105_s30 + $0x64] ss:$24 sps:$4 sm:$0xff]   ;;  %s4683_s21 = scalar_lea.vmem %s4625_s9, %s4113_s18 }
 0x19c   : > { %1285 = vmatprep.subr.bf16.mxu0 %v3576_v52  ;;  %v3584_v58 = vld [vmem:[%s4105_s30 + $0x60] ss:$24 sps:$4 sm:$0xff]   ;;  %v3585_v59 = vld [vmem:[%s4105_s30 + $0x94] ss:$24 sps:$4 sm:$0xff]   ;;  %v3587_v60 = vld [vmem:[%s4105_s30 + $0x90] ss:$24 sps:$4 sm:$0xff]  }
 0x19d   : > { %1286 = vmatpush1.bf16.msra.mxu0 %v3578_v53  ;;  %v3588_v61 = vld [vmem:[%s4105_s30 + $0xc4] ss:$24 sps:$4 sm:$0xff]   ;;  %v3602_v63 = vld [vmem:[%s4105_s30 + $0x8] ss:$24 sps:$4 sm:$0xff]   ;;  %v3605_v2 = vld [vmem:[%s4105_s30 + $0x38] ss:$24 sps:$4 sm:$0xff]  }
 0x19e   : > { %1287 = vmatprep.subr.bf16.mxu0 %v3579_v55  ;;  %v3600_v62 = vld [vmem:[%s4105_s30 + $0xc] ss:$24 sps:$4 sm:$0xff]   ;;  %v3603_v0 = vld [vmem:[%s4105_s30 + $0x3c] ss:$24 sps:$4 sm:$0xff]   ;;  %v3590_v1 = vld [vmem:[%s4105_s30 + $0xc0] ss:$24 sps:$4 sm:$0xff]  }
 0x19f   : > { %1338 = vmatprep.subr.bf16.mxu1 %v3600_v62  ;;  %v3591_v3 = vld [vmem:[%s4105_s30 + $0xf4] ss:$24 sps:$4 sm:$0xff]   ;;  %v3593_v5 = vld [vmem:[%s4105_s30 + $0xf0] ss:$24 sps:$4 sm:$0xff]   ;;  %v3594_v7 = vld [vmem:[%s4105_s30 + $0x124] ss:$24 sps:$4 sm:$0xff]  }
 0x1a0   : > { %1339 = vmatpush1.bf16.msra.mxu1 %v3602_v63  ;;  %v3606_v4 = vld [vmem:[%s4105_s30 + $0x6c] ss:$24 sps:$4 sm:$0xff]   ;;  %v3608_v6 = vld [vmem:[%s4105_s30 + $0x68] ss:$24 sps:$4 sm:$0xff]   ;;  %v3609_v8 = vld [vmem:[%s4105_s30 + $0x9c] ss:$24 sps:$4 sm:$0xff]  }
 0x1a1   : > { %1288 = vmatpush1.bf16.msra.mxu0 %v3581_v56  ;;  %1340 = vmatprep.subr.bf16.mxu1 %v3603_v0  ;;  %v3596_v9 = vld [vmem:[%s4105_s30 + $0x120] ss:$24 sps:$4 sm:$0xff]   ;;  %v3597_v11 = vld [vmem:[%s4105_s30 + $0x154] ss:$24 sps:$4 sm:$0xff]   ;;  %v3599_v13 = vld [vmem:[%s4105_s30 + $0x150] ss:$24 sps:$4 sm:$0xff]  }
 0x1a2   : > { %1289 = vmatprep.subr.bf16.mxu0 %v3582_v57  ;;  %v3611_v10 = vld [vmem:[%s4105_s30 + $0x98] ss:$24 sps:$4 sm:$0xff]   ;;  %v3612_v12 = vld [vmem:[%s4105_s30 + $0xcc] ss:$24 sps:$4 sm:$0xff]   ;;  %v3614_v16 = vld [vmem:[%s4105_s30 + $0xc8] ss:$24 sps:$4 sm:$0xff]  }
 0x1a3   : > { %v4207_v14 = vld [vmem:[#allocation2] sm:$0xff]  ;;  %v4209_v15 = vld [vmem:[#allocation2 + $0x8] sm:$0xff]  ;;  %v3615_v17 = vld [vmem:[%s4105_s30 + $0xfc] ss:$24 sps:$4 sm:$0xff]   ;;  %vm3903_vm0 = vmmov 0   ;;  %v4257_v45 = vshrl.u32 %v1015_v44, 7 }
 0x1a4   : > { %1341 = vmatpush1.bf16.msra.mxu1 %v3605_v2  ;;  %v4215_v18 = vpack.c.bf16 %v4209_v15, %v4207_v14  ;;  %v3626_v19 = vld [vmem:[%s4105_s30 + $0x14] ss:$24 sps:$4 sm:$0xff]   ;;  %v3617_v20 = vld [vmem:[%s4105_s30 + $0xf8] ss:$24 sps:$4 sm:$0xff]   ;;  %v3620_v23 = vld [vmem:[%s4105_s30 + $0x128] ss:$24 sps:$4 sm:$0xff]  }
 0x1a5   : > { %1290 = vmatpush1.bf16.msra.mxu0 %v3584_v58  ;;  %1342 = vmatprep.subr.bf16.mxu1 %v3606_v4  ;;  %v3618_v21 = vld [vmem:[%s4105_s30 + $0x12c] ss:$24 sps:$4 sm:$0xff]   ;;  %v3624_v22 = vld [vmem:[%s4105_s30 + $0x10] ss:$24 sps:$4 sm:$0xff]   ;;  %v4225_v26 = vld [vmem:[#allocation2 + $0x18] sm:$0xff]  ;;  %v1017_v46 = vsub.s32 0, %v4257_v45 }
 0x1a6   : > { %1291 = vmatprep.subr.bf16.mxu0 %v3585_v59  ;;  %v3629_v24 = vld [vmem:[%s4105_s30 + $0x44] ss:$24 sps:$4 sm:$0xff]   ;;  %v4223_v25 = vld [vmem:[#allocation2 + $0x10] sm:$0xff]  ;;  %v3627_v28 = vld [vmem:[%s4105_s30 + $0x40] ss:$24 sps:$4 sm:$0xff]   ;;  %v1021_v48 = vsub.s32 1, %v4257_v45 }
 0x1a7   : > { %v3621_v27 = vld [vmem:[%s4105_s30 + $0x15c] ss:$24 sps:$4 sm:$0xff]   ;;  %v3623_v29 = vld [vmem:[%s4105_s30 + $0x158] ss:$24 sps:$4 sm:$0xff]   ;;  %v964_v31 = vpack.c.bf16 %v4225_v26, %v4223_v25  ;;  %v1013_v47 = vld [vmem:[%s4129_s20] sm:$0x3f] }
 0x1a8   : > { %1343 = vmatpush1.bf16.msra.mxu1 %v3608_v6  ;;  %v3632_v30 = vld [vmem:[%s4105_s30 + $0x74] ss:$24 sps:$4 sm:$0xff]   ;;  %v3630_v32 = vld [vmem:[%s4105_s30 + $0x70] ss:$24 sps:$4 sm:$0xff]   ;;  %v3635_v33 = vld [vmem:[%s4105_s30 + $0xa4] ss:$24 sps:$4 sm:$0xff]   ;;  %v1018_v49 = vrot.slane %v1013_v47, %v1017_v46  ;;  %v1022_v51 = vrot.slane %v1013_v47, %v1021_v48 }
 0x1a9   : > { %1292 = vmatpush1.bf16.msra.mxu0 %v3587_v60  ;;  %1344 = vmatprep.subr.bf16.mxu1 %v3609_v8  ;;  %v3633_v34 = vld [vmem:[%s4105_s30 + $0xa0] ss:$24 sps:$4 sm:$0xff]   ;;  %v3638_v35 = vld [vmem:[%s4105_s30 + $0xd4] ss:$24 sps:$4 sm:$0xff]   ;;  %v3636_v36 = vld [vmem:[%s4105_s30 + $0xd0] ss:$24 sps:$4 sm:$0xff]  }
 0x1aa   : > { %1293 = vmatprep.subr.bf16.mxu0 %v3588_v61  ;;  %v3641_v37 = vld [vmem:[%s4105_s30 + $0x104] ss:$24 sps:$4 sm:$0xff]   ;;  %v3639_v38 = vld [vmem:[%s4105_s30 + $0x100] ss:$24 sps:$4 sm:$0xff]   ;;  %v3644_v39 = vld [vmem:[%s4105_s30 + $0x134] ss:$24 sps:$4 sm:$0xff]  }
 0x1ab   : > { %v3642_v40 = vld [vmem:[%s4105_s30 + $0x130] ss:$24 sps:$4 sm:$0xff]   ;;  %v3647_v41 = vld [vmem:[%s4105_s30 + $0x164] ss:$24 sps:$4 sm:$0xff]   ;;  %v3645_v42 = vld [vmem:[%s4105_s30 + $0x160] ss:$24 sps:$4 sm:$0xff]  }
 0x1ac   : > { %1345 = vmatpush1.bf16.msra.mxu1 %v3611_v10  ;;  %v1025_v61 = vsub.s32 2, %v4257_v45  ;;  %v1029_v63 = vsub.s32 3, %v4257_v45  ;;  %s4679_s1 = sld [smem:[#allocation17_spill]]  ;;  %vm1499_vm1 = vcmask 130048   ;;  %p3266_p9 = scmp.ne.s32.totalorder %s3888_s24, 1 }
 0x1ad   : > { %1294 = vmatpush1.bf16.msra.mxu0 %v3590_v1  ;;  %1346 = vmatprep.subr.bf16.mxu1 %v3612_v12  ;;  %vm3905_vm2 = vmmov (!%p3266_p9), 0   ;;  %s4685_s16 = sld [smem:[#allocation26_spill]] (!%p3266_p9)  ;;  %vm2701_vm3 = vcmask (!%p3266_p9), 1040384  }
 0x1ae   : > { %1295 = vmatprep.subr.bf16.mxu0 %v3591_v3  ;;  %v1026_v1 = vrot.slane %v1013_v47, %v1025_v61  ;;  %v1030_v4 = vrot.slane %v1013_v47, %v1029_v63 }
 0x1b0   : > { %1347 = vmatpush1.bf16.msra.mxu1 %v3614_v16 }
 0x1b1   : > { %1296 = vmatpush1.bf16.msra.mxu0 %v3593_v5  ;;  %1348 = vmatprep.subr.bf16.mxu1 %v3615_v17 }
 0x1b2   : > { %1297 = vmatprep.subr.bf16.mxu0 %v3594_v7  ;;  %s4680_s26 = smov %s4679_s1 }
 0x1b4   : > { %1349 = vmatpush1.bf16.msra.mxu1 %v3617_v20 }
 0x1b5   : > { %1298 = vmatpush1.bf16.msra.mxu0 %v3596_v9  ;;  %1350 = vmatprep.subr.bf16.mxu1 %v3618_v21 }
 0x1b6   : > { %1299 = vmatprep.subr.bf16.mxu0 %v3597_v11 }
 0x1b8   : > { %1351 = vmatpush1.bf16.msra.mxu1 %v3620_v23 }
 0x1b9   : > { %1300 = vmatpush1.bf16.msra.mxu0 %v3599_v13  ;;  %1352 = vmatprep.subr.bf16.mxu1 %v3621_v27 }
 0x1ba   : > { %1391 = vmatprep.subr.bf16.mxu0 %v3626_v19 }
 0x1bc   : > { %1318 = vmatmul.mubr.bf16.vlgmr.msra.gmra.mrb[0].mxu0 %v4215_v18  ;;  %1353 = vmatpush1.bf16.msra.mxu1 %v3623_v29 }
 0x1bd   : > { %1327 = vmatprep.mubr.bf16.mxu0 %v3901_v54  ;;  %1392 = vmatpush1.bf16.msra.mxu0 %v3624_v22 }
 0x1be   : > { %1393 = vmatprep.subr.bf16.mxu0 %v3629_v24  ;;  %3479 = vmatprep.subr.bf16.mxu1 %v3626_v19 }
 0x1bf   : > { %1371 = vmatmul.mubr.bf16.vlgmr.msra.gmra.mrb[0].mxu1 %v4215_v18 }
 0x1c0   : > { %3487 = vmatpush1.bf16.msra.mxu1 %v3624_v22  ;;  %1380 = vmatprep.mubr.bf16.mxu1 %v3901_v54 }
 0x1c1   : > { %1394 = vmatpush1.bf16.msra.mxu0 %v3627_v28  ;;  %3480 = vmatprep.subr.bf16.mxu1 %v3629_v24 }
 0x1c2   : > { %1395 = vmatprep.subr.bf16.mxu0 %v3632_v30 }
 0x1c4   : > { %1328 = vmatmul.mubr.bf16.gmra.mrb[4].mxu0 %v964_v31  ;;  %3488 = vmatpush1.bf16.msra.mxu1 %v3627_v28 }
 0x1c5   : > { %1423 = vmatprep.mubr.bf16.mxu0 %v3901_v54  ;;  %1396 = vmatpush1.bf16.msra.mxu0 %v3630_v32 }
 0x1c6   : > { %1397 = vmatprep.subr.bf16.mxu0 %v3635_v33  ;;  %3481 = vmatprep.subr.bf16.mxu1 %v3632_v30 }
 0x1c7   : > { %1381 = vmatmul.mubr.bf16.gmra.mrb[4].mxu1 %v964_v31 }
 0x1c8   : > { %3489 = vmatpush1.bf16.msra.mxu1 %v3630_v32  ;;  %1433 = vmatprep.mubr.bf16.mxu1 %v3901_v54 }
 0x1c9   : > { %1398 = vmatpush1.bf16.msra.mxu0 %v3633_v34  ;;  %3482 = vmatprep.subr.bf16.mxu1 %v3635_v33 }
 0x1ca   : > { %1399 = vmatprep.subr.bf16.mxu0 %v3638_v35 }
 0x1cc   : > { %3490 = vmatpush1.bf16.msra.mxu1 %v3633_v34 }
 0x1cd   : > { %1400 = vmatpush1.bf16.msra.mxu0 %v3636_v36  ;;  %3483 = vmatprep.subr.bf16.mxu1 %v3638_v35 }
 0x1ce   : > { %1401 = vmatprep.subr.bf16.mxu0 %v3641_v37 }
 0x1d0   : > { %3491 = vmatpush1.bf16.msra.mxu1 %v3636_v36  ;;  %v1033_v36 = vsub.s32 4, %v4257_v45 }
 0x1d1   : > { %1402 = vmatpush1.bf16.msra.mxu0 %v3639_v38  ;;  %3484 = vmatprep.subr.bf16.mxu1 %v3641_v37  ;;  %v1037_v37 = vsub.s32 5, %v4257_v45 }
 0x1d2   : > { %1403 = vmatprep.subr.bf16.mxu0 %v3644_v39 }
 0x1d4   : > { %3492 = vmatpush1.bf16.msra.mxu1 %v3639_v38  ;;  %v1034_v38 = vrot.slane %v1013_v47, %v1033_v36 }
 0x1d5   : > { %1404 = vmatpush1.bf16.msra.mxu0 %v3642_v40  ;;  %3485 = vmatprep.subr.bf16.mxu1 %v3644_v39  ;;  %v1038_v39 = vrot.slane %v1013_v47, %v1037_v37  ;;  %v4298_v47 = vld [vmem:[%s4679_s1] ss:$0 sm:$0xff]  ;;  %s4687_s1 = sld [smem:[#allocation27_spill]] (!%p3266_p9) }
 0x1d6   : > { %1405 = vmatprep.subr.bf16.mxu0 %v3647_v41 }
 0x1d8   : > { %3493 = vmatpush1.bf16.msra.mxu1 %v3642_v40 }
 0x1d9   : > { %1406 = vmatpush1.bf16.msra.mxu0 %v3645_v42  ;;  %3486 = vmatprep.subr.bf16.mxu1 %v3647_v41 }
 0x1da   : > { %3415 = vmatprep.subr.bf16.mxu0 %v3902_v43 }
 0x1dc   : > { %1424 = vmatmul.mubr.bf16.vlgmr.msra.gmra.mrb[8].mxu0 %v4215_v18  ;;  %3494 = vmatpush1.bf16.msra.mxu1 %v3645_v42 }
 0x1dd   : > { %3391 = vmatprep.subr.bf16.mxu1 %v3902_v43  ;;  %3417 = vmatprep.mubr.msk.bf16.mxu0 %vm3903_vm0, %v3902_v43 }
 0x1df   : > { %1434 = vmatmul.mubr.bf16.vlgmr.msra.gmra.mrb[8].mxu1 %v964_v31 }
 0x1e0   : > { %3393 = vmatprep.mubr.msk.bf16.mxu1 %vm3903_vm0, %v3902_v43 }
 0x28f   : > { %v1319_v50 = vpop.f32.mrb[0].mxu0 }
 0x290   : > { %v1321_v52 = vpop.f32.mrb[1].mxu0  ;;  %v1320_v55 = vadd.f32 %v1319_v50, %v1018_v49 }
 0x291   : > { %v1323_v53 = vpop.f32.mrb[2].mxu0  ;;  %v1322_v58 = vadd.f32 %v1321_v52, %v1022_v51 }
 0x292   : > { %v1324_v56 = vadd.f32 %v1323_v53, %v1018_v49  ;;  %v1325_v57 = vpop.f32.mrb[3].mxu0  ;;  %v1372_v9 = vpop.f32.mrb[0].mxu1 }
 0x293   : > { %v1326_v59 = vadd.f32 %v1325_v57, %v1022_v51  ;;  %v1373_v11 = vadd.f32 %v1372_v9, %v1026_v1  ;;  %v1374_v12 = vpop.f32.mrb[1].mxu1 }
 0x294   : > { %v1445_v60 = vpack.c.bf16 %v1324_v56, %v1320_v55  ;;  %v4269_v16 = vadd.f32 %v1374_v12, %v1030_v4  ;;  %v1376_v17 = vpop.f32.mrb[2].mxu1 }
 0x295   : > { %v1446_v62 = vpack.c.bf16 %v1326_v59, %v1322_v58  ;;  %v1377_v19 = vadd.f32 %v1376_v17, %v1026_v1  ;;  %v1378_v20 = vpop.f32.mrb[3].mxu1 }
 0x296   : > { %v4271_v21 = vadd.f32 %v1378_v20, %v1030_v4 }
 0x297   : > { %3392 = vmatpush3.bf16.xpose.msra.mxu1 %v1446_v62  ;;  %v1329_v0 = vpop.f32.mrb[4].mxu0  ;;  %v1447_v22 = vpack.c.bf16 %v1377_v19, %v1373_v11 }
 0x298   : > { %3397 = vmatprep.subr.bf16.mxu1 %v3902_v43  ;;  %v1330_v2 = vadd.f32 %v1329_v0, %v1018_v49  ;;  %v1331_v3 = vpop.f32.mrb[5].mxu0  ;;  %v1569_v23 = vpack.c.bf16 %v4271_v21, %v4269_v16 }
 0x299   : > { %v1332_v5 = vadd.f32 %v1331_v3, %v1022_v51  ;;  %v1333_v6 = vpop.f32.mrb[6].mxu0 }
 0x29a   : > { %v1334_v7 = vadd.f32 %v1333_v6, %v1018_v49  ;;  %v1335_v8 = vpop.f32.mrb[7].mxu0  ;;  %v1382_v24 = vpop.f32.mrb[4].mxu1 }
 0x29b   : > { %v1336_v10 = vadd.f32 %v1335_v8, %v1022_v51  ;;  %v4279_v27 = vadd.f32 %v1382_v24, %v1026_v1  ;;  %v1384_v28 = vpop.f32.mrb[5].mxu1 }
 0x29c   : > { %v1688_v13 = vpack.c.bf16 %v1334_v7, %v1330_v2  ;;  %v1385_v29 = vadd.f32 %v1384_v28, %v1030_v4  ;;  %v1386_v30 = vpop.f32.mrb[6].mxu1 }
 0x29d   : > { %v1689_v18 = vpack.c.bf16 %v1336_v10, %v1332_v5  ;;  %v4281_v31 = vadd.f32 %v1386_v30, %v1026_v1  ;;  %v1388_v32 = vpop.f32.mrb[7].mxu1 }
 0x29e   : > { %3394 = vmatmul.mubr.bf16.vlgmr.msra.gmra.mrb[12].mxu1 %v1445_v60  ;;  %v1389_v33 = vadd.f32 %v1388_v32, %v1030_v4 }
 0x29f   : > { %3416 = vmatpush3.bf16.xpose.msra.mxu0 %v1689_v18  ;;  %3399 = vmatprep.mubr.msk.bf16.mxu1 %vm3903_vm0, %v3902_v43  ;;  %v1690_v34 = vpack.c.bf16 %v4281_v31, %v4279_v27 }
 0x2a0   : > { %3427 = vmatprep.subr.bf16.mxu0 %v3902_v43  ;;  %3398 = vmatpush3.bf16.msra.mxu1 %v1447_v22  ;;  %v1811_v35 = vpack.c.bf16 %v1389_v33, %v1385_v29 }
 0x2a1   : > { %3403 = vmatprep.subr.bf16.mxu1 %v3902_v43 }
 0x2a6   : > { %3418 = vmatmul.mubr.bf16.vlgmr.msra.gmra.mrb[12].mxu0 %v1688_v13 }
 0x2a7   : > { %3429 = vmatprep.mubr.msk.bf16.mxu0 %vm3903_vm0, %v3902_v43 }
 0x2af   : > { %v1425_v2 = vpop.f32.mrb[8].mxu0 }
 0x2b0   : > { %v1426_v3 = vadd.f32 %v1425_v2, %v1034_v38  ;;  %v1427_v4 = vpop.f32.mrb[9].mxu0 }
 0x2b1   : > { %v1428_v5 = vadd.f32 %v1427_v4, %v1038_v39  ;;  %v1429_v6 = vpop.f32.mrb[10].mxu0 }
 0x2b2   : > { %v1435_v40 = vpop.f32.mrb[8].mxu1  ;;  %v1430_v7 = vadd.f32 %v1429_v6, %v1034_v38  ;;  %v1431_v8 = vpop.f32.mrb[11].mxu0 }
 0x2b3   : > { %v1436_v41 = vadd.f32 %v1435_v40, %v1034_v38  ;;  %v1437_v42 = vpop.f32.mrb[9].mxu1  ;;  %v1432_v9 = vadd.f32 %v1431_v8, %v1038_v39 }
 0x2b4   : > { %v4289_v44 = vadd.f32 %v1437_v42, %v1038_v39  ;;  %v1439_v49 = vpop.f32.mrb[10].mxu1  ;;  %v1570_v11 = vpack.c.bf16 %v1430_v7, %v1426_v3  ;;  %v3209_v3 = vld [vmem:[%s4680_s26 + $0x1] ss:$0 sm:$0xff] }
 0x2b5   : > { %v1440_v50 = vadd.f32 %v1439_v49, %v1034_v38  ;;  %v1441_v51 = vpop.f32.mrb[11].mxu1  ;;  %v1571_v13 = vpack.c.bf16 %v1432_v9, %v1428_v5 }
 0x2b6   : > { %v4291_v52 = vadd.f32 %v1441_v51, %v1038_v39 }
 0x2b7   : > { %v1812_v53 = vpack.c.bf16 %v1440_v50, %v1436_v41 }
 0x2b8   : > { %v1813_v55 = vpack.c.bf16 %v4291_v52, %v4289_v44 }
 0x2b9   : > { %3428 = vmatpush3.bf16.xpose.msra.mxu0 %v1812_v53 }
 0x2c0   : > { %3430 = vmatmul.mubr.bf16.vlgmr.msra.gmra.mrb[16].mxu0 %v1811_v35 }
 0x371   : > { %v1482_v56 = vpop.f32.mrb[12].mxu1 }
 0x372   : > { %v1489_v57 = vmul.f32 0.125, %v1482_v56  ;;  %v3395_v58 = vpop.f32.mrb[13].mxu1 }
 0x373   : > { %v1485_v59 = vpop.f32.mrb[14].mxu1 }
 0x374   : > { %v1490_v60 = vmul.f32 0.125, %v1485_v59  ;;  %v3396_v61 = vpop.f32.mrb[15].mxu1  ;;  %v1497_v62 = vadd.f32 %v4298_v47, %v1489_v57 }
 0x376   : > { %v1500_v63 = vsel %vm1499_vm1, %v1497_v62, -inf  ;;  %v1498_v0 = vadd.f32 %v4298_v47, %v1490_v60 }
 0x377   : > { %1501 = vmax.xlane.f32.xlu0 %v1500_v63 }
 0x378   : > { %v1503_v1 = vsel %vm1499_vm1, %v1498_v0, -inf }
 0x379   : > { %v1725_v10 = vpop.f32.mrb[12].mxu0 }
 0x37a   : > { %v3419_v12 = vpop.f32.mrb[13].mxu0 }
 0x37b   : > { %1504 = vmax.xlane.f32.xlu0 %v1503_v1  ;;  %v1728_v17 = vpop.f32.mrb[14].mxu0 }
 0x37c   : > { %v3420_v18 = vpop.f32.mrb[15].mxu0 }
 0x393   : > { %v1848_v19 = vpop.f32.mrb[16].mxu0 }
 0x394   : > { %v3431_v20 = vpop.f32.mrb[17].mxu0  ;;  %v1855_v4 = vmul.f32 0.125, %v1848_v19 }
 0x395   : > { %v1851_v22 = vpop.f32.mrb[18].mxu0 }
 0x396   : > { %v3432_v24 = vpop.f32.mrb[19].mxu0  ;;  %v1856_v8 = vmul.f32 0.125, %v1851_v22  ;;  %v1857_v12 = vadd.f32 %v3209_v3, %v1855_v4  ;;  %v3651_v4 = vld [vmem:[%s4120_s4 + $0x8] sm:$0xff]  }
 0x398   : > { %v1859_v18 = vsel %vm1499_vm1, %v1857_v12, -inf }
 0x404   : > { %v1502_v28 = vpop.xlane.xlu0 %1501 }
 0x405   : > { %v1506_v29 = vsub.f32 %v1497_v62, %v1502_v28  ;;  %v1732_v62 = vmul.f32 0.125, %v1725_v10 }
 0x407   : > { %v1508_v30 = vmul.f32 1.442695, %v1506_v29  ;;  %v1740_v7 = vadd.f32 %v3209_v3, %v1732_v62 }
 0x408   : > { %v1505_v32 = vpop.xlane.xlu0 %1504 }
 0x409   : > { %3704 = vpow2.f32 %v1508_v30  ;;  %v1507_v33 = vsub.f32 %v1498_v0, %v1505_v32 }
 0x40b   : > { %v1510_v35 = vmul.f32 1.442695, %v1507_v33 }
 0x40d   : > { %3706 = vpow2.f32 %v1510_v35 }
 0x413   : > { %v3705_v36 = vpop.eup %3704 }
 0x414   : > { %v1512_v37 = vsel %vm1499_vm1, %v3705_v36, 0.0 }
 0x415   : > { %1513 = vadd.xlane.f32.xlu1 %v1512_v37 }
 0x417   : > { %v3707_v38 = vpop.eup %3706 }
 0x418   : > { %v1515_v39 = vsel %vm1499_vm1, %v3707_v38, 0.0 }
 0x419   : > { %1516 = vadd.xlane.f32.xlu1 %v1515_v39 }
 0x4a2   : > { %v1514_v40 = vpop.xlane.xlu1 %1513 }
 0x4a3   : > { %3708 = vrcp.f32 %v1514_v40 }
 0x4a6   : > { %v1517_v41 = vpop.xlane.xlu1 %1516 }
 0x4a7   : > { %3710 = vrcp.f32 %v1517_v41 }
 0x4ad   : > { %v3709_v42 = vpop.eup %3708 }
 0x4ae   : > { %v1520_v50 = vmul.f32 %v3709_v42, %v3705_v36 }
 0x4b1   : > { %v3711_v49 = vpop.eup %3710 }
 0x4b2   : > { %v1521_v51 = vmul.f32 %v3711_v49, %v3707_v38 }
 0x4b4   : > { %v1522_v53 = vpack.c.bf16 %v1521_v51, %v1520_v50 }
 0x4b6   : > { %3400 = vmatmul.mubr.msk.bf16.vlgmr.msra.gmra.mrb[16].mxu1 %vm1499_vm1, %v1522_v53 }
 0x4b7   : > { %3404 = vmatpush3.bf16.xpose.msra.mxu1 %v1570_v11  ;;  %3405 = vmatprep.mubr.msk.bf16.mxu1 %vm3903_vm0, %v3902_v43  ;;  %v1742_v11 = vsel %vm1499_vm1, %v1740_v7, -inf }
 0x4b8   : > { %3409 = vmatprep.subr.bf16.mxu1 %v3902_v43 }
 0x4be   : > { %3406 = vmatmul.mubr.bf16.vlgmr.msra.gmra.mrb[20].mxu1 %v1569_v23  ;;  %v1733_v23 = vmul.f32 0.125, %v1728_v17  ;;  %v1858_v17 = vadd.f32 %v3209_v3, %v1856_v8  ;;  %v3655_v8 = vld [vmem:[%s4120_s4 + $0x18] sm:$0xff]  }
 0x4bf   : > { %3410 = vmatpush3.bf16.msra.mxu1 %v1571_v13  ;;  %3411 = vmatprep.mubr.msk.bf16.mxu1 %vm3903_vm0, %v3902_v43 }
 0x4c0   : > { %3421 = vmatprep.subr.bf16.mxu1 %v3902_v43  ;;  %v1741_v10 = vadd.f32 %v3209_v3, %v1733_v23  ;;  %v3650_v3 = vld [vmem:[%s4120_s4 + $0x48] sm:$0xff]  }
 0x4c2   : > { %v1745_v13 = vsel %vm1499_vm1, %v1741_v10, -inf }
 0x589   : > { %v4316_v56 = vpop.f32.mrb[16].mxu1 }
 0x58a   : > { %v3401_v57 = vpop.f32.mrb[17].mxu1 }
 0x58b   : > { %v4318_v58 = vpop.f32.mrb[18].mxu1 }
 0x58c   : > { %v1936_v59 = vpack.c.bf16 %v4318_v58, %v4316_v56  ;;  %v3402_v60 = vpop.f32.mrb[19].mxu1 }
 0x591   : > { %v1606_v61 = vpop.f32.mrb[20].mxu1 }
 0x592   : > { %v1613_v63 = vmul.f32 0.125, %v1606_v61  ;;  %v3407_v16 = vpop.f32.mrb[21].mxu1 }
 0x593   : > { %v1609_v21 = vpop.f32.mrb[22].mxu1 }
 0x594   : > { %v1614_v0 = vmul.f32 0.125, %v1609_v21  ;;  %v3408_v1 = vpop.f32.mrb[23].mxu1  ;;  %v1615_v2 = vadd.f32 %v4298_v47, %v1613_v63 }
 0x595   : > { %v3648_v1 = vld [vmem:[%s4120_s4 + $0x40] sm:$0xff]  }
 0x596   : > { %v1617_v5 = vsel %vm1499_vm1, %v1615_v2, -inf  ;;  %v1616_v6 = vadd.f32 %v4298_v47, %v1614_v0  ;;  %v1862_v47 = vsel %vm1499_vm1, %v1858_v17, -inf  ;;  %3317 = vmatprep.subr.bf16.mxu0 %v3648_v1  ;;  %v3212_v1 = vld [vmem:[%s4681_s5] ss:$0 sm:$0xff] }
 0x597   : > { %1618 = vmax.xlane.f32.xlu0 %v1617_v5  ;;  %v3652_v5 = vld [vmem:[%s4120_s4 + $0x50] sm:$0xff]  }
 0x598   : > { %v1620_v9 = vsel %vm1499_vm1, %v1616_v6, -inf }
 0x599   : > { %1621 = vmax.xlane.f32.xlu1 %v1620_v9  ;;  %v3656_v9 = vld [vmem:[%s4120_s4 + $0x60] sm:$0xff]  }
 0x59b   : > { %1743 = vmax.xlane.f32.xlu0 %v1742_v11  ;;  %v3658_v11 = vld [vmem:[%s4120_s4 + $0x68] sm:$0xff]  }
 0x59d   : > { %1746 = vmax.xlane.f32.xlu1 %v1745_v13  ;;  %v3660_v13 = vld [vmem:[%s4120_s4 + $0x70] sm:$0xff]  }
 0x59f   : > { %1860 = vmax.xlane.f32.xlu0 %v1859_v18 }
 0x5a1   : > { %1863 = vmax.xlane.f32.xlu1 %v1862_v47 }
 0x624   : > { %v1619_v19 = vpop.xlane.xlu0 %1618 }
 0x625   : > { %v1623_v20 = vsub.f32 %v1615_v2, %v1619_v19  ;;  %v3649_v2 = vld [vmem:[%s4120_s4] sm:$0xff]  }
 0x626   : > { %v1622_v22 = vpop.xlane.xlu1 %1621  ;;  %3318 = vmatpush3.bf16.msra.mxu0 %v3649_v2 }
 0x627   : > { %v1625_v24 = vmul.f32 1.442695, %v1623_v20  ;;  %v1624_v28 = vsub.f32 %v1616_v6, %v1622_v22  ;;  %3319 = vmatprep.subr.bf16.mxu0 %v3650_v3  ;;  %v3653_v6 = vld [vmem:[%s4120_s4 + $0x10] sm:$0xff]  }
 0x628   : > { %v1744_v29 = vpop.xlane.xlu0 %1743 }
 0x629   : > { %3712 = vpow2.f32 %v1625_v24  ;;  %v1627_v30 = vmul.f32 1.442695, %v1624_v28  ;;  %v1748_v32 = vsub.f32 %v1740_v7, %v1744_v29  ;;  %v3654_v7 = vld [vmem:[%s4120_s4 + $0x58] sm:$0xff]  }
 0x62a   : > { %v1747_v33 = vpop.xlane.xlu1 %1746  ;;  %3320 = vmatpush3.bf16.msra.mxu0 %v3651_v4 }
 0x62b   : > { %3714 = vpow2.f32 %v1627_v30  ;;  %v1750_v35 = vmul.f32 1.442695, %v1748_v32  ;;  %v1749_v36 = vsub.f32 %v1741_v10, %v1747_v33  ;;  %3321 = vmatprep.subr.bf16.mxu0 %v3652_v5  ;;  %v3657_v10 = vld [vmem:[%s4120_s4 + $0x20] sm:$0xff]  }
 0x62c   : > { %v1861_v37 = vpop.xlane.xlu0 %1860 }
 0x62d   : > { %3716 = vpow2.f32 %v1750_v35  ;;  %v1752_v38 = vmul.f32 1.442695, %v1749_v36  ;;  %v1865_v39 = vsub.f32 %v1857_v12, %v1861_v37  ;;  %v3659_v12 = vld [vmem:[%s4120_s4 + $0x28] sm:$0xff]  }
 0x62e   : > { %v1864_v40 = vpop.xlane.xlu1 %1863  ;;  %3322 = vmatpush3.bf16.msra.mxu0 %v3653_v6 }
 0x62f   : > { %3718 = vpow2.f32 %v1752_v38  ;;  %v1867_v41 = vmul.f32 1.442695, %v1865_v39  ;;  %v1866_v42 = vsub.f32 %v1858_v17, %v1864_v40  ;;  %3323 = vmatprep.subr.bf16.mxu0 %v3654_v7  ;;  %v3661_v17 = vld [vmem:[%s4120_s4 + $0x30] sm:$0xff]  }
 0x631   : > { %3720 = vpow2.f32 %v1867_v41  ;;  %v1869_v49 = vmul.f32 1.442695, %v1866_v42  ;;  %v3662_v42 = vld [vmem:[%s4120_s4 + $0x78] sm:$0xff]  }
 0x632   : > { %3324 = vmatpush3.bf16.msra.mxu0 %v3655_v8 }
 0x633   : > { %v3713_v50 = vpop.eup %3712  ;;  %3722 = vpow2.f32 %v1869_v49  ;;  %3325 = vmatprep.subr.bf16.mxu0 %v3656_v9  ;;  %v3663_v49 = vld [vmem:[%s4120_s4 + $0x38] sm:$0xff]  }
 0x634   : > { %v1629_v51 = vsel %vm1499_vm1, %v3713_v50, 0.0 }
 0x635   : > { %v3715_v53 = vpop.eup %3714  ;;  %1630 = vadd.xlane.f32.xlu0 %v1629_v51 }
 0x636   : > { %v1632_v57 = vsel %vm1499_vm1, %v3715_v53, 0.0  ;;  %3326 = vmatpush3.bf16.msra.mxu0 %v3657_v10 }
 0x637   : > { %v4335_v60 = vpop.eup %3716  ;;  %1633 = vadd.xlane.f32.xlu1 %v1632_v57  ;;  %3327 = vmatprep.subr.bf16.mxu0 %v3658_v11 }
 0x638   : > { %v1754_v61 = vsel %vm1499_vm1, %v4335_v60, 0.0 }
 0x639   : > { %v3719_v62 = vpop.eup %3718  ;;  %1755 = vadd.xlane.f32.xlu0 %v1754_v61 }
 0x63a   : > { %v1757_v63 = vsel %vm1499_vm1, %v3719_v62, 0.0  ;;  %3328 = vmatpush3.bf16.msra.mxu0 %v3659_v12 }
 0x63b   : > { %v4340_v16 = vpop.eup %3720  ;;  %1758 = vadd.xlane.f32.xlu1 %v1757_v63  ;;  %3329 = vmatprep.subr.bf16.mxu0 %v3660_v13 }
 0x63c   : > { %v1871_v21 = vsel %vm1499_vm1, %v4340_v16, 0.0 }
 0x63d   : > { %v4344_v23 = vpop.eup %3722  ;;  %1872 = vadd.xlane.f32.xlu0 %v1871_v21 }
 0x63e   : > { %v1874_v0 = vsel %vm1499_vm1, %v4344_v23, 0.0  ;;  %3330 = vmatpush3.bf16.msra.mxu0 %v3661_v17 }
 0x63f   : > { %1875 = vadd.xlane.f32.xlu1 %v1874_v0  ;;  %3331 = vmatprep.subr.bf16.mxu0 %v3662_v42  ;;  %v3675_v42 = vld [vmem:[%s4142_s6 + $0x34] ss:$8 sps:$4 sm:$0xff]  }
 0x642   : > { %3332 = vmatpush3.bf16.msra.mxu0 %v3663_v49  ;;  %v3673_v49 = vld [vmem:[%s4142_s6 + $0x30] ss:$8 sps:$4 sm:$0xff]  }
 0x6c2   : > { %v1631_v18 = vpop.xlane.xlu0 %1630 }
 0x6c3   : > { %3724 = vrcp.f32 %v1631_v18 }
 0x6c4   : > { %v1634_v47 = vpop.xlane.xlu1 %1633 }
 0x6c5   : > { %3726 = vrcp.f32 %v1634_v47 }
 0x6c6   : > { %v1756_v19 = vpop.xlane.xlu0 %1755 }
 0x6c8   : > { %v1759_v20 = vpop.xlane.xlu1 %1758 }
 0x6c9   : > { %3728 = vrcp.f32 %v1759_v20  ;;  %v3666_v20 = vld [vmem:[%s4142_s6 + $0x4] ss:$8 sps:$4 sm:$0xff]  }
 0x6ca   : > { %3730 = vrcp.f32 %v1756_v19  ;;  %v1873_v32 = vpop.xlane.xlu0 %1872  ;;  %v3664_v19 = vld [vmem:[%s4142_s6] ss:$8 sps:$4 sm:$0xff]  }
 0x6cc   : > { %v1876_v24 = vpop.xlane.xlu1 %1875 }
 0x6cd   : > { %v3725_v22 = vpop.eup %3724  ;;  %3732 = vrcp.f32 %v1876_v24 }
 0x6ce   : > { %v1637_v29 = vmul.f32 %v3725_v22, %v3713_v50  ;;  %3734 = vrcp.f32 %v1873_v32  ;;  %v3667_v22 = vld [vmem:[%s4142_s6 + $0x10] ss:$8 sps:$4 sm:$0xff]  }
 0x6cf   : > { %v3727_v28 = vpop.eup %3726 }
 0x6d0   : > { %v1638_v30 = vmul.f32 %v3727_v28, %v3715_v53 }
 0x6d2   : > { %v1639_v33 = vpack.c.bf16 %v1638_v30, %v1637_v29 }
 0x6d3   : > { %v3729_v35 = vpop.eup %3728 }
 0x6d4   : > { %3412 = vmatmul.mubr.msk.bf16.vlgmr.msra.gmra.mrb[24].mxu1 %vm1499_vm1, %v1639_v33  ;;  %v3731_v36 = vpop.eup %3730  ;;  %v1763_v37 = vmul.f32 %v3729_v35, %v3719_v62 }
 0x6d5   : > { %3422 = vmatpush3.bf16.msra.mxu1 %v1690_v34  ;;  %3423 = vmatprep.mubr.msk.bf16.mxu1 %vm3903_vm0, %v3902_v43  ;;  %v1762_v38 = vmul.f32 %v3731_v36, %v4335_v60 }
 0x6d6   : > { %3433 = vmatprep.subr.bf16.mxu1 %v3902_v43 }
 0x6d7   : > { %v1764_v39 = vpack.c.bf16 %v1763_v37, %v1762_v38  ;;  %v3733_v40 = vpop.eup %3732 }
 0x6d8   : > { %v3735_v41 = vpop.eup %3734  ;;  %v1880_v27 = vmul.f32 %v3733_v40, %v4344_v23 }
 0x6d9   : > { %v1879_v31 = vmul.f32 %v3735_v41, %v4340_v16 }
 0x6db   : > { %v1881_v34 = vpack.c.bf16 %v1880_v27, %v1879_v31  ;;  %v3672_v27 = vld [vmem:[%s4142_s6 + $0x24] ss:$8 sps:$4 sm:$0xff]   ;;  %v3670_v31 = vld [vmem:[%s4142_s6 + $0x20] ss:$8 sps:$4 sm:$0xff]  }
 0x6dc   : > { %3424 = vmatmul.mubr.msk.bf16.vlgmr.msra.gmra.mrb[28].mxu1 %vm1499_vm1, %v1764_v39 }
 0x6dd   : > { %3434 = vmatpush3.bf16.msra.mxu1 %v1813_v55  ;;  %3435 = vmatprep.mubr.msk.bf16.mxu1 %vm3903_vm0, %v3902_v43 }
 0x6de   : > { %2305 = vmatprep.subr.bf16.mxu1 %v3666_v20 }
 0x6e4   : > { %3436 = vmatmul.mubr.msk.bf16.vlgmr.msra.gmra.mrb[32].mxu1 %vm1499_vm1, %v1881_v34 }
 0x6e5   : > { %2337 = vmatprep.mubr.bf16.mxu1 %v3901_v54  ;;  %2306 = vmatpush1.bf16.msra.mxu1 %v3664_v19 }
 0x7a7   : > { %v1677_v50 = vpop.f32.mrb[24].mxu1 }
 0x7a8   : > { %v3413_v51 = vpop.f32.mrb[25].mxu1 }
 0x7a9   : > { %v1680_v44 = vpop.f32.mrb[26].mxu1  ;;  %v3676_v51 = vld [vmem:[%s4142_s6 + $0x40] ss:$8 sps:$4 sm:$0xff]  }
 0x7aa   : > { %v1937_v52 = vpack.c.bf16 %v1680_v44, %v1677_v50  ;;  %v3414_v55 = vpop.f32.mrb[27].mxu1  ;;  %v3678_v50 = vld [vmem:[%s4142_s6 + $0x44] ss:$8 sps:$4 sm:$0xff]   ;;  %v3681_v44 = vld [vmem:[%s4142_s6 + $0x54] ss:$8 sps:$4 sm:$0xff]  }
 0x7ab   : > { %v3684_v55 = vld [vmem:[%s4142_s6 + $0x64] ss:$8 sps:$4 sm:$0xff]  }
 0x7ac   : > { %2107 = vmatprep.mubr.bf16.mxu0 %v1937_v52  ;;  %v3679_v52 = vld [vmem:[%s4142_s6 + $0x50] ss:$8 sps:$4 sm:$0xff]  }
 0x7ad   : > { %2108 = vmatmul.mubr.bf16.vlgmr.msra.gmra.mrb[20].mxu0 %v1936_v59 }
 0x7af   : > { %v1802_v43 = vpop.f32.mrb[28].mxu1 }
 0x7b0   : > { %v3425_v53 = vpop.f32.mrb[29].mxu1 }
 0x7b1   : > { %v1805_v57 = vpop.f32.mrb[30].mxu1  ;;  %v3687_v53 = vld [vmem:[%s4142_s6 + $0x74] ss:$8 sps:$4 sm:$0xff]  }
 0x7b2   : > { %v1938_v60 = vpack.c.bf16 %v1805_v57, %v1802_v43  ;;  %v3426_v61 = vpop.f32.mrb[31].mxu1  ;;  %v3682_v43 = vld [vmem:[%s4142_s6 + $0x60] ss:$8 sps:$4 sm:$0xff]   ;;  %v3685_v57 = vld [vmem:[%s4142_s6 + $0x70] ss:$8 sps:$4 sm:$0xff]  }
 0x7b7   : > { %v1919_v62 = vpop.f32.mrb[32].mxu1 }
 0x7b8   : > { %v3437_v63 = vpop.f32.mrb[33].mxu1 }
 0x7b9   : > { %v1922_v16 = vpop.f32.mrb[34].mxu1 }
 0x7ba   : > { %v1939_v21 = vpack.c.bf16 %v1922_v16, %v1919_v62  ;;  %v3438_v23 = vpop.f32.mrb[35].mxu1 }
 0x7bc   : > { %2115 = vmatprep.mubr.bf16.mxu0 %v1939_v21 }
 0x7bd   : > { %2116 = vmatmul.mubr.bf16.gmra.mrb[24].mxu0 %v1938_v60 }
 0x880   : > { %v3333_v0 = vpop.f32.mrb[20].mxu0 }
 0x881   : > { %v3334_v56 = vpop.f32.mrb[21].mxu0 }
 0x882   : > { %v3335_v58 = vadd.f32 %v3334_v56, %v3333_v0  ;;  %v3336_v59 = vpop.f32.mrb[22].mxu0  ;;  %v3229_v0 = vld [vmem:[%s4682_s0] ss:$0 sm:$0xff] }
 0x883   : > { %v3337_v2 = vpop.f32.mrb[23].mxu0 }
 0x884   : > { %v2110_v3 = vadd.f32 %v3335_v58, %v3212_v1  ;;  %v3338_v4 = vadd.f32 %v3337_v2, %v3336_v59 }
 0x886   : > { %v2113_v5 = vadd.f32 %v3338_v4, %v3212_v1  ;;  %v2124_v6 = vadd.f32 %v2110_v3, %v4207_v14 }
 0x888   : > { %2130 = vadd.xlane.f32.xlu0 %v2124_v6  ;;  %v2125_v7 = vadd.f32 %v2113_v5, %v4209_v15  ;;  %v3669_v15 = vld [vmem:[%s4142_s6 + $0x14] ss:$8 sps:$4 sm:$0xff]  }
 0x889   : > { %2307 = vmatprep.subr.bf16.mxu1 %v3669_v15 }
 0x88a   : > { %2132 = vadd.xlane.f32.xlu1 %v2125_v7  ;;  %2308 = vmatpush1.bf16.msra.mxu1 %v3667_v22 }
 0x88b   : > { %2309 = vmatprep.subr.bf16.mxu1 %v3672_v27  ;;  %v2213_v27 = vld [vmem:[%s4153_s17] sm:$0x3] }
 0x88e   : > { %2310 = vmatpush1.bf16.msra.mxu1 %v3670_v31  ;;  %v2218_v31 = vrot.slane %v2213_v27, %v1017_v46 }
 0x88f   : > { %2311 = vmatprep.subr.bf16.mxu1 %v3675_v42 }
 0x890   : > { %v3339_v8 = vpop.f32.mrb[24].mxu0 }
 0x891   : > { %v3340_v9 = vpop.f32.mrb[25].mxu0 }
 0x892   : > { %v3341_v10 = vadd.f32 %v3340_v9, %v3339_v8  ;;  %v3342_v11 = vpop.f32.mrb[26].mxu0  ;;  %2312 = vmatpush1.bf16.msra.mxu1 %v3673_v49 }
 0x893   : > { %v3343_v12 = vpop.f32.mrb[27].mxu0  ;;  %2313 = vmatprep.subr.bf16.mxu1 %v3678_v50 }
 0x894   : > { %v2118_v13 = vadd.f32 %v3341_v10, %v3212_v1  ;;  %v3344_v17 = vadd.f32 %v3343_v12, %v3342_v11 }
 0x896   : > { %v2121_v18 = vadd.f32 %v3344_v17, %v3212_v1  ;;  %v2126_v47 = vadd.f32 %v2118_v13, %v4223_v25  ;;  %2314 = vmatpush1.bf16.msra.mxu1 %v3676_v51 }
 0x897   : > { %2315 = vmatprep.subr.bf16.mxu1 %v3681_v44 }
 0x898   : > { %2134 = vadd.xlane.f32.xlu0 %v2126_v47  ;;  %v2127_v14 = vadd.f32 %v2121_v18, %v4225_v26 }
 0x89a   : > { %2136 = vadd.xlane.f32.xlu1 %v2127_v14  ;;  %2316 = vmatpush1.bf16.msra.mxu1 %v3679_v52 }
 0x89b   : > { %2317 = vmatprep.subr.bf16.mxu1 %v3684_v55 }
 0x89e   : > { %2318 = vmatpush1.bf16.msra.mxu1 %v3682_v43 }
 0x89f   : > { %2319 = vmatprep.subr.bf16.mxu1 %v3687_v53 }
 0x8a2   : > { %2320 = vmatpush1.bf16.msra.mxu1 %v3685_v57 }
 0x915   : > { %v2131_v24 = vpop.xlane.xlu0 %2130 }
 0x916   : > { %v2139_v28 = vmul.f32 0.0078125, %v2131_v24  ;;  %v3689_v24 = vld [vmem:[%s4148_s29] sm:$0xff]  }
 0x917   : > { %v2133_v29 = vpop.xlane.xlu1 %2132 }
 0x918   : > { %v2143_v30 = vsub.f32 %v2124_v6, %v2139_v28  ;;  %v2140_v32 = vmul.f32 0.0078125, %v2133_v29  ;;  %v3690_v28 = vld [vmem:[%s4148_s29 + $0x48] sm:$0xff]  }
 0x919   : > { %v3691_v29 = vld [vmem:[%s4148_s29 + $0x8] sm:$0xff]  }
 0x91a   : > { %v2144_v25 = vsub.f32 %v2125_v7, %v2140_v32  ;;  %v2147_v33 = vmul.f32 %v2143_v30, %v2143_v30  ;;  %v3230_v7 = vld [vmem:[%s4683_s21] ss:$0 sm:$0xff]  ;;  %v3693_v32 = vld [vmem:[%s4148_s29 + $0x10] sm:$0xff]  }
 0x91c   : > { %2151 = vadd.xlane.f32.xlu0 %v2147_v33  ;;  %v2148_v26 = vmul.f32 %v2144_v25, %v2144_v25  ;;  %v3695_v33 = vld [vmem:[%s4148_s29 + $0x18] sm:$0xff]  }
 0x91e   : > { %2153 = vadd.xlane.f32.xlu1 %v2148_v26  ;;  %v3696_v26 = vld [vmem:[%s4148_s29 + $0x60] sm:$0xff]  }
 0x925   : > { %v2135_v35 = vpop.xlane.xlu0 %2134 }
 0x926   : > { %v2141_v36 = vmul.f32 0.0078125, %v2135_v35  ;;  %v3697_v35 = vld [vmem:[%s4148_s29 + $0x20] sm:$0xff]  }
 0x927   : > { %v2137_v37 = vpop.xlane.xlu1 %2136 }
 0x928   : > { %v2145_v38 = vsub.f32 %v2126_v47, %v2141_v36  ;;  %v2142_v39 = vmul.f32 0.0078125, %v2137_v37  ;;  %v3698_v36 = vld [vmem:[%s4148_s29 + $0x68] sm:$0xff]  }
 0x929   : > { %v3699_v37 = vld [vmem:[%s4148_s29 + $0x28] sm:$0xff]  }
 0x92a   : > { %v2146_v40 = vsub.f32 %v2127_v14, %v2142_v39  ;;  %v2149_v41 = vmul.f32 %v2145_v38, %v2145_v38  ;;  %v3701_v39 = vld [vmem:[%s4148_s29 + $0x30] sm:$0xff]  }
 0x92c   : > { %2155 = vadd.xlane.f32.xlu0 %v2149_v41  ;;  %v2150_v34 = vmul.f32 %v2146_v40, %v2146_v40  ;;  %v3703_v41 = vld [vmem:[%s4148_s29 + $0x38] sm:$0xff]  }
 0x92e   : > { %2157 = vadd.xlane.f32.xlu1 %v2150_v34  ;;  %v2222_v34 = vrot.slane %v2213_v27, %v1021_v48 }
 0x9a9   : > { %v2152_v60 = vpop.xlane.xlu0 %2151 }
 0x9aa   : > { %v2159_v61 = vmul.f32 0.0078125, %v2152_v60 }
 0x9ab   : > { %v2154_v62 = vpop.xlane.xlu1 %2153 }
 0x9ac   : > { %v2163_v63 = vadd.f32 1e-12, %v2159_v61  ;;  %v2160_v16 = vmul.f32 0.0078125, %v2154_v62 }
 0x9ae   : > { %3736 = vrsqrt.f32 %v2163_v63  ;;  %v2164_v21 = vadd.f32 1e-12, %v2160_v16 }
 0x9b0   : > { %3738 = vrsqrt.f32 %v2164_v21 }
 0x9b8   : > { %v3737_v23 = vpop.eup %3736 }
 0x9b9   : > { %v2171_v1 = vmul.f32 %v3737_v23, %v2143_v30  ;;  %v2156_v56 = vpop.xlane.xlu0 %2155  ;;  %v3692_v30 = vld [vmem:[%s4148_s29 + $0x50] sm:$0xff]  }
 0x9ba   : > { %v3739_v58 = vpop.eup %3738  ;;  %v2161_v59 = vmul.f32 0.0078125, %v2156_v56 }
 0x9bb   : > { %v2172_v2 = vmul.f32 %v3739_v58, %v2144_v25  ;;  %v2158_v3 = vpop.xlane.xlu1 %2157  ;;  %v2181_v4 = vmul.f32 %v3229_v0, %v2171_v1  ;;  %v3694_v25 = vld [vmem:[%s4148_s29 + $0x58] sm:$0xff]  }
 0x9bc   : > { %v2165_v5 = vadd.f32 1e-12, %v2161_v59  ;;  %v2162_v6 = vmul.f32 0.0078125, %v2158_v3 }
 0x9bd   : > { %v2182_v8 = vmul.f32 %v3229_v0, %v2172_v2  ;;  %v4420_v10 = vadd.f32 %v3230_v7, %v2181_v4 }
 0x9be   : > { %3740 = vrsqrt.f32 %v2165_v5  ;;  %v2166_v9 = vadd.f32 1e-12, %v2162_v6 }
 0x9bf   : > { %v4422_v11 = vadd.f32 %v3230_v7, %v2182_v8 }
 0x9c0   : > { %3742 = vrsqrt.f32 %v2166_v9 }
 0x9c1   : > { %v2195_v12 = vpack.c.bf16 %v4422_v11, %v4420_v10 }
 0x9c3   : > { %2338 = vmatmul.mubr.bf16.vlgmr.msra.gmra.mrb[36].mxu1 %v2195_v12 }
 0x9c4   : > { %2347 = vmatprep.mubr.bf16.mxu1 %v3901_v54  ;;  %v3688_v54 = vld [vmem:[%s4148_s29 + $0x40] sm:$0xff]  }
 0x9c5   : > { %3345 = vmatprep.subr.bf16.mxu0 %v3688_v54 }
 0x9c6   : > { %3346 = vmatpush3.bf16.msra.mxu0 %v3689_v24 }
 0x9c7   : > { %3347 = vmatprep.subr.bf16.mxu0 %v3690_v28 }
 0x9c8   : > { %v3741_v13 = vpop.eup %3740 }
 0x9c9   : > { %v2173_v17 = vmul.f32 %v3741_v13, %v2145_v38  ;;  %v3700_v38 = vld [vmem:[%s4148_s29 + $0x70] sm:$0xff]  }
 0x9ca   : > { %v3743_v18 = vpop.eup %3742  ;;  %3348 = vmatpush3.bf16.msra.mxu0 %v3691_v29 }
 0x9cb   : > { %v2174_v47 = vmul.f32 %v3743_v18, %v2146_v40  ;;  %v2183_v14 = vmul.f32 %v3229_v0, %v2173_v17  ;;  %3349 = vmatprep.subr.bf16.mxu0 %v3692_v30  ;;  %v3702_v40 = vld [vmem:[%s4148_s29 + $0x78] sm:$0xff]  }
 0x9cd   : > { %v2184_v19 = vmul.f32 %v3229_v0, %v2174_v47  ;;  %v4427_v20 = vadd.f32 %v3230_v7, %v2183_v14 }
 0x9ce   : > { %3350 = vmatpush3.bf16.msra.mxu0 %v3693_v32 }
 0x9cf   : > { %v4429_v15 = vadd.f32 %v3230_v7, %v2184_v19  ;;  %3351 = vmatprep.subr.bf16.mxu0 %v3694_v25 }
 0x9d1   : > { %v2196_v22 = vpack.c.bf16 %v4429_v15, %v4427_v20 }
 0x9d2   : > { %3352 = vmatpush3.bf16.msra.mxu0 %v3695_v33 }
 0x9d3   : > { %2348 = vmatmul.mubr.bf16.gmra.mrb[40].mxu1 %v2196_v22  ;;  %3353 = vmatprep.subr.bf16.mxu0 %v3696_v26 }
 0x9d6   : > { %3354 = vmatpush3.bf16.msra.mxu0 %v3697_v35 }
 0x9d7   : > { %3355 = vmatprep.subr.bf16.mxu0 %v3698_v36 }
 0x9da   : > { %3356 = vmatpush3.bf16.msra.mxu0 %v3699_v37 }
 0x9db   : > { %3357 = vmatprep.subr.bf16.mxu0 %v3700_v38 }
 0x9de   : > { %3358 = vmatpush3.bf16.msra.mxu0 %v3701_v39 }
 0x9df   : > { %3359 = vmatprep.subr.bf16.mxu0 %v3702_v40 }
 0x9e2   : > { %3360 = vmatpush3.bf16.msra.mxu0 %v3703_v41 }
 0xa96   : > { %v2339_v42 = vpop.f32.mrb[36].mxu1 }
 0xa97   : > { %v4454_v49 = vadd.f32 %v2339_v42, %v2218_v31  ;;  %v2341_v50 = vpop.f32.mrb[37].mxu1 }
 0xa98   : > { %v4456_v51 = vadd.f32 %v2341_v50, %v2222_v34  ;;  %v2343_v44 = vpop.f32.mrb[38].mxu1 }
 0xa99   : > { %v2358_v52 = vmul.f32 %v4454_v49, %v4454_v49  ;;  %v4460_v55 = vadd.f32 %v2343_v44, %v2218_v31  ;;  %v2345_v43 = vpop.f32.mrb[39].mxu1 }
 0xa9a   : > { %v2359_v53 = vmul.f32 %v4456_v51, %v4456_v51  ;;  %v4464_v46 = vadd.f32 %v2345_v43, %v2222_v34 }
 0xa9b   : > { %v2366_v45 = vmul.f32 %v2358_v52, %v4454_v49  ;;  %v2360_v48 = vmul.f32 %v4460_v55, %v4460_v55 }
 0xa9c   : > { %v2367_v57 = vmul.f32 %v2359_v53, %v4456_v51  ;;  %v2361_v60 = vmul.f32 %v4464_v46, %v4464_v46 }
 0xa9d   : > { %v2374_v61 = vmul.f32 0.044715, %v2366_v45  ;;  %v2368_v62 = vmul.f32 %v2360_v48, %v4460_v55 }
 0xa9e   : > { %v2375_v63 = vmul.f32 0.044715, %v2367_v57  ;;  %v2369_v16 = vmul.f32 %v2361_v60, %v4464_v46 }
 0xa9f   : > { %v2382_v21 = vadd.f32 %v2374_v61, %v4454_v49  ;;  %v2376_v23 = vmul.f32 0.044715, %v2368_v62 }
 0xaa0   : > { %v2383_v0 = vadd.f32 %v2375_v63, %v4456_v51  ;;  %v2377_v1 = vmul.f32 0.044715, %v2369_v16 }
 0xaa1   : > { %v2390_v56 = vmul.f32 0.7978846, %v2382_v21  ;;  %v2384_v58 = vadd.f32 %v2376_v23, %v4460_v55 }
 0xaa2   : > { %v2391_v59 = vmul.f32 0.7978846, %v2383_v0  ;;  %v2385_v2 = vadd.f32 %v2377_v1, %v4464_v46 }
 0xaa3   : > { %3744 = vtanh.f32 %v2390_v56  ;;  %v2392_v3 = vmul.f32 0.7978846, %v2384_v58 }
 0xaa4   : > { %3746 = vtanh.f32 %v2391_v59  ;;  %v2393_v4 = vmul.f32 0.7978846, %v2385_v2 }
 0xaa5   : > { %3748 = vtanh.f32 %v2392_v3 }
 0xaa6   : > { %3750 = vtanh.f32 %v2393_v4  ;;  %v2349_v5 = vpop.f32.mrb[40].mxu1 }
 0xaa7   : > { %v4478_v6 = vadd.f32 %v2349_v5, %v2218_v31  ;;  %v2351_v7 = vpop.f32.mrb[41].mxu1 }
 0xaa8   : > { %v4480_v8 = vadd.f32 %v2351_v7, %v2222_v34  ;;  %v2353_v9 = vpop.f32.mrb[42].mxu1 }
 0xaa9   : > { %v2362_v12 = vmul.f32 %v4478_v6, %v4478_v6  ;;  %v2354_v13 = vadd.f32 %v2353_v9, %v2218_v31  ;;  %v2355_v17 = vpop.f32.mrb[43].mxu1 }
 0xaaa   : > { %v2363_v18 = vmul.f32 %v4480_v8, %v4480_v8  ;;  %v2356_v47 = vadd.f32 %v2355_v17, %v2222_v34 }
 0xaab   : > { %v2370_v14 = vmul.f32 %v2362_v12, %v4478_v6  ;;  %v2364_v19 = vmul.f32 %v2354_v13, %v2354_v13 }
 0xaac   : > { %v2371_v22 = vmul.f32 %v2363_v18, %v4480_v8  ;;  %v2365_v54 = vmul.f32 %v2356_v47, %v2356_v47  ;;  %v3247_v18 = vld [vmem:[%s868_s22] ss:$0 sm:$0xff]  ;;  %s4686_s22 = sld [smem:[#allocation25_spill]] (!%p3266_p9) }
 0xaad   : > { %v3745_v24 = vpop.eup %3744  ;;  %v2378_v28 = vmul.f32 0.044715, %v2370_v14  ;;  %v2372_v29 = vmul.f32 %v2364_v19, %v2354_v13 }
 0xaae   : > { %v3747_v30 = vpop.eup %3746  ;;  %v2406_v32 = vadd.f32 1.0, %v3745_v24  ;;  %v2379_v25 = vmul.f32 0.044715, %v2371_v22  ;;  %v2373_v33 = vmul.f32 %v2365_v54, %v2356_v47 }
 0xaaf   : > { %v3749_v26 = vpop.eup %3748  ;;  %v2386_v35 = vadd.f32 %v2378_v28, %v4478_v6  ;;  %v2380_v36 = vmul.f32 0.044715, %v2372_v29  ;;  %v2407_v37 = vadd.f32 1.0, %v3747_v30 }
 0xab0   : > { %v3751_v38 = vpop.eup %3750  ;;  %v2414_v39 = vmul.f32 0.5, %v2406_v32  ;;  %v2408_v40 = vadd.f32 1.0, %v3749_v26  ;;  %v2387_v41 = vadd.f32 %v2379_v25, %v4480_v8  ;;  %v2381_v27 = vmul.f32 0.044715, %v2373_v33 }
 0xab1   : > { %v2394_v31 = vmul.f32 0.7978846, %v2386_v35  ;;  %v2388_v34 = vadd.f32 %v2380_v36, %v2354_v13  ;;  %v2409_v42 = vadd.f32 1.0, %v3751_v38  ;;  %v2415_v50 = vmul.f32 0.5, %v2407_v37 }
 0xab2   : > { %v2416_v44 = vmul.f32 0.5, %v2408_v40  ;;  %v2395_v52 = vmul.f32 0.7978846, %v2387_v41  ;;  %v2389_v43 = vadd.f32 %v2381_v27, %v2356_v47  ;;  %v2422_v48 = vmul.f32 %v2414_v39, %v4454_v49 }
 0xab3   : > { %3752 = vtanh.f32 %v2394_v31  ;;  %v2396_v53 = vmul.f32 0.7978846, %v2388_v34  ;;  %v2417_v45 = vmul.f32 0.5, %v2409_v42  ;;  %v2423_v61 = vmul.f32 %v2415_v50, %v4456_v51 }
 0xab4   : > { %v2424_v57 = vmul.f32 %v2416_v44, %v4460_v55  ;;  %3754 = vtanh.f32 %v2395_v52  ;;  %v2397_v60 = vmul.f32 0.7978846, %v2389_v43 }
 0xab5   : > { %3756 = vtanh.f32 %v2396_v53  ;;  %v2425_v62 = vmul.f32 %v2417_v45, %v4464_v46 }
 0xab6   : > { %v2430_v63 = vpack.c.bf16 %v2424_v57, %v2422_v48  ;;  %3758 = vtanh.f32 %v2397_v60 }
 0xab7   : > { %v2431_v16 = vpack.c.bf16 %v2425_v62, %v2423_v61 }
 0xab9   : > { %2601 = vmatprep.mubr.bf16.mxu0 %v2431_v16 }
 0xaba   : > { %2602 = vmatmul.mubr.bf16.vlgmr.msra.gmra.mrb[28].mxu0 %v2430_v63  ;;  %v3264_v63 = vld [vmem:[%s871_s28] ss:$0 sm:$0xff]  ;;  %s4684_s28 = sld [smem:[#allocation24_spill]] (!%p3266_p9) }
 0xabd   : > { %v3753_v21 = vpop.eup %3752 }
 0xabe   : > { %v3755_v23 = vpop.eup %3754  ;;  %v2410_v0 = vadd.f32 1.0, %v3753_v21 }
 0xabf   : > { %v3757_v1 = vpop.eup %3756  ;;  %v2411_v56 = vadd.f32 1.0, %v3755_v23 }
 0xac0   : > { %v3759_v49 = vpop.eup %3758  ;;  %v2412_v55 = vadd.f32 1.0, %v3757_v1  ;;  %v2418_v58 = vmul.f32 0.5, %v2410_v0  ;;  %v3265_v0 = vld [vmem:[%s874_s10] ss:$0 sm:$0xff] }
 0xac1   : > { %v2413_v59 = vadd.f32 1.0, %v3759_v49  ;;  %v2419_v2 = vmul.f32 0.5, %v2411_v56 }
 0xac2   : > { %v2420_v3 = vmul.f32 0.5, %v2412_v55  ;;  %v2426_v46 = vmul.f32 %v2418_v58, %v4478_v6 }
 0xac3   : > { %v2421_v51 = vmul.f32 0.5, %v2413_v59  ;;  %v2427_v5 = vmul.f32 %v2419_v2, %v4480_v8 }
 0xac4   : > { %v2428_v4 = vmul.f32 %v2420_v3, %v2354_v13 }
 0xac5   : > { %v2429_v7 = vmul.f32 %v2421_v51, %v2356_v47 }
 0xac6   : > { %v2432_v9 = vpack.c.bf16 %v2428_v4, %v2426_v46 }
 0xac7   : > { %v2433_v12 = vpack.c.bf16 %v2429_v7, %v2427_v5 }
 0xac9   : > { %2609 = vmatprep.mubr.bf16.mxu0 %v2433_v12 }
 0xaca   : > { %2610 = vmatmul.mubr.bf16.gmra.mrb[32].mxu0 %v2432_v9 }
 0xb8d   : > { %v3361_v17 = vpop.f32.mrb[28].mxu0 }
 0xb8e   : > { %v3362_v14 = vpop.f32.mrb[29].mxu0 }
 0xb8f   : > { %v3363_v19 = vadd.f32 %v3362_v14, %v3361_v17  ;;  %v3364_v22 = vpop.f32.mrb[30].mxu0 }
 0xb90   : > { %v3365_v54 = vpop.f32.mrb[31].mxu0 }
 0xb91   : > { %v2604_v24 = vadd.f32 %v3363_v19, %v3247_v18  ;;  %v3366_v6 = vadd.f32 %v3365_v54, %v3364_v22  ;;  %v3768_v19 = vld [vmem:[%s4684_s28] sm:$0xff] (!%p3266_p9)   ;;  %v3904_v22 = vmov (!%p3266_p9), 0.0   ;;  %v3769_v54 = vld [vmem:[%s4684_s28 + $0x8] sm:$0xff] (!%p3266_p9)  }
 0xb92   : > { %3439 = vmatprep.subr.bf16.mxu0 (!%p3266_p9), %v3904_v22  ;;  %3459 = vmatprep.subr.bf16.mxu1 (!%p3266_p9), %v3904_v22 }
 0xb93   : > { %v2607_v13 = vadd.f32 %v3366_v6, %v3247_v18  ;;  %v2618_v8 = vadd.f32 %v2604_v24, %v4420_v10  ;;  %3440 = vmatpush3.bf16.msra.mxu0 (!%p3266_p9), %v3768_v19  ;;  %3455 = vmatprep.mubr.msk.bf16.mxu0 (!%p3266_p9), %vm3905_vm2, %v3904_v22  ;;  %v3770_v24 = vld [vmem:[%s4684_s28 + $0x10] sm:$0xff] (!%p3266_p9)   ;;  %v3776_v6 = vld [vmem:[%s4685_s16] sm:$0xff] (!%p3266_p9)  }
 0xb94   : > { %3441 = vmatprep.subr.bf16.mxu0 (!%p3266_p9), %v3904_v22  ;;  %3475 = vmatprep.mubr.msk.bf16.mxu1 (!%p3266_p9), %vm3905_vm2, %v3904_v22 }
 0xb95   : > { %2624 = vadd.xlane.f32.xlu0 %v2618_v8  ;;  %v2619_v47 = vadd.f32 %v2607_v13, %v4422_v11  ;;  %v3771_v13 = vld [vmem:[%s4684_s28 + $0x18] sm:$0xff] (!%p3266_p9)   ;;  %3460 = vmatpush3.bf16.msra.mxu1 (!%p3266_p9), %v3776_v6 }
 0xb96   : > { %3461 = vmatprep.subr.bf16.mxu1 (!%p3266_p9), %v3904_v22 }
 0xb97   : > { %2626 = vadd.xlane.f32.xlu1 %v2619_v47  ;;  %3442 = vmatpush3.bf16.msra.mxu0 (!%p3266_p9), %v3769_v54 }
 0xb98   : > { %3443 = vmatprep.subr.bf16.mxu0 (!%p3266_p9), %v3904_v22 }
 0xb9b   : > { %3444 = vmatpush3.bf16.msra.mxu0 (!%p3266_p9), %v3770_v24 }
 0xb9c   : > { %3445 = vmatprep.subr.bf16.mxu0 (!%p3266_p9), %v3904_v22 }
 0xb9d   : > { %v3367_v28 = vpop.f32.mrb[32].mxu0 }
 0xb9e   : > { %v3368_v29 = vpop.f32.mrb[33].mxu0 }
 0xb9f   : > { %v3369_v30 = vadd.f32 %v3368_v29, %v3367_v28  ;;  %v3370_v32 = vpop.f32.mrb[34].mxu0  ;;  %3446 = vmatpush3.bf16.msra.mxu0 (!%p3266_p9), %v3771_v13  ;;  %v3778_v28 = vld [vmem:[%s4685_s16 + $0x10] sm:$0xff] (!%p3266_p9)   ;;  %v3773_v29 = vld [vmem:[%s4684_s28 + $0x28] sm:$0xff] (!%p3266_p9)  }
 0xba0   : > { %v3371_v25 = vpop.f32.mrb[35].mxu0  ;;  %3447 = vmatprep.subr.bf16.mxu0 (!%p3266_p9), %v3904_v22 }
 0xba1   : > { %v2612_v33 = vadd.f32 %v3369_v30, %v3247_v18  ;;  %v3372_v26 = vadd.f32 %v3371_v25, %v3370_v32  ;;  %v3779_v32 = vld [vmem:[%s4685_s16 + $0x18] sm:$0xff] (!%p3266_p9)   ;;  %v3774_v25 = vld [vmem:[%s4684_s28 + $0x30] sm:$0xff] (!%p3266_p9)  }
 0xba3   : > { %v2615_v35 = vadd.f32 %v3372_v26, %v3247_v18  ;;  %v2620_v36 = vadd.f32 %v2612_v33, %v4427_v20 }
 0xba5   : > { %2628 = vadd.xlane.f32.xlu0 %v2620_v36  ;;  %v2621_v37 = vadd.f32 %v2615_v35, %v4429_v15  ;;  %v3775_v35 = vld [vmem:[%s4684_s28 + $0x38] sm:$0xff] (!%p3266_p9)  }
 0xba7   : > { %2630 = vadd.xlane.f32.xlu1 %v2621_v37 }
 0xc22   : > { %v2625_v38 = vpop.xlane.xlu0 %2624 }
 0xc23   : > { %v2632_v10 = vmul.f32 0.0078125, %v2625_v38  ;;  %v3780_v38 = vld [vmem:[%s4685_s16 + $0x20] sm:$0xff] (!%p3266_p9)  }
 0xc24   : > { %v2627_v39 = vpop.xlane.xlu1 %2626 }
 0xc25   : > { %v2636_v40 = vsub.f32 %v2618_v8, %v2632_v10  ;;  %v2633_v11 = vmul.f32 0.0078125, %v2627_v39  ;;  %v3777_v8 = vld [vmem:[%s4685_s16 + $0x8] sm:$0xff] (!%p3266_p9)   ;;  %v3782_v39 = vld [vmem:[%s4685_s16 + $0x30] sm:$0xff] (!%p3266_p9)  }
 0xc26   : > { %3462 = vmatpush3.bf16.msra.mxu1 (!%p3266_p9), %v3777_v8  ;;  %v3781_v10 = vld [vmem:[%s4685_s16 + $0x28] sm:$0xff] (!%p3266_p9)  }
 0xc27   : > { %v2637_v41 = vsub.f32 %v2619_v47, %v2633_v11  ;;  %v2640_v27 = vmul.f32 %v2636_v40, %v2636_v40  ;;  %v3772_v47 = vld [vmem:[%s4684_s28 + $0x20] sm:$0xff] (!%p3266_p9)   ;;  %3463 = vmatprep.subr.bf16.mxu1 (!%p3266_p9), %v3904_v22 }
 0xc28   : > { %3448 = vmatpush3.bf16.msra.mxu0 (!%p3266_p9), %v3772_v47  ;;  %v3267_v11 = vld [vmem:[%s4686_s22] ss:$0 sm:$0xff] (!%p3266_p9) }
 0xc29   : > { %2644 = vadd.xlane.f32.xlu0 %v2640_v27  ;;  %v2641_v31 = vmul.f32 %v2637_v41, %v2637_v41  ;;  %3449 = vmatprep.subr.bf16.mxu0 (!%p3266_p9), %v3904_v22 }
 0xc2a   : > { %3464 = vmatpush3.bf16.msra.mxu1 (!%p3266_p9), %v3778_v28 }
 0xc2b   : > { %2646 = vadd.xlane.f32.xlu1 %v2641_v31  ;;  %3465 = vmatprep.subr.bf16.mxu1 (!%p3266_p9), %v3904_v22 }
 0xc2c   : > { %3450 = vmatpush3.bf16.msra.mxu0 (!%p3266_p9), %v3773_v29 }
 0xc2d   : > { %3451 = vmatprep.subr.bf16.mxu0 (!%p3266_p9), %v3904_v22 }
 0xc2e   : > { %3466 = vmatpush3.bf16.msra.mxu1 (!%p3266_p9), %v3779_v32 }
 0xc2f   : > { %3467 = vmatprep.subr.bf16.mxu1 (!%p3266_p9), %v3904_v22 }
 0xc30   : > { %3452 = vmatpush3.bf16.msra.mxu0 (!%p3266_p9), %v3774_v25 }
 0xc31   : > { %3453 = vmatprep.subr.bf16.mxu0 (!%p3266_p9), %v3904_v22 }
 0xc32   : > { %v2629_v34 = vpop.xlane.xlu0 %2628  ;;  %3468 = vmatpush3.bf16.msra.mxu1 (!%p3266_p9), %v3780_v38 }
 0xc33   : > { %v2634_v42 = vmul.f32 0.0078125, %v2629_v34  ;;  %3469 = vmatprep.subr.bf16.mxu1 (!%p3266_p9), %v3904_v22 }
 0xc34   : > { %v2631_v50 = vpop.xlane.xlu1 %2630  ;;  %3454 = vmatpush3.bf16.msra.mxu0 (!%p3266_p9), %v3775_v35 }
 0xc35   : > { %v2638_v44 = vsub.f32 %v2620_v36, %v2634_v42  ;;  %v2635_v20 = vmul.f32 0.0078125, %v2631_v50 }
 0xc36   : > { %3470 = vmatpush3.bf16.msra.mxu1 (!%p3266_p9), %v3781_v10 }
 0xc37   : > { %v2639_v52 = vsub.f32 %v2621_v37, %v2635_v20  ;;  %v2642_v43 = vmul.f32 %v2638_v44, %v2638_v44  ;;  %3471 = vmatprep.subr.bf16.mxu1 (!%p3266_p9), %v3904_v22  ;;  %v3276_v20 = vld [vmem:[%s4687_s1] ss:$0 sm:$0xff] (!%p3266_p9) }
 0xc39   : > { %2648 = vadd.xlane.f32.xlu0 %v2642_v43  ;;  %v2643_v15 = vmul.f32 %v2639_v52, %v2639_v52 }
 0xc3a   : > { %3472 = vmatpush3.bf16.msra.mxu1 (!%p3266_p9), %v3782_v39 }
 0xc3b   : > { %2650 = vadd.xlane.f32.xlu1 %v2643_v15  ;;  %3473 = vmatprep.subr.bf16.mxu1 (!%p3266_p9), %v3904_v22 }
 0xcb6   : > { %v2645_v53 = vpop.xlane.xlu0 %2644 }
 0xcb7   : > { %v2652_v45 = vmul.f32 0.0078125, %v2645_v53 }
 0xcb8   : > { %v2647_v48 = vpop.xlane.xlu1 %2646 }
 0xcb9   : > { %v2656_v57 = vadd.f32 1e-12, %v2652_v45  ;;  %v2653_v60 = vmul.f32 0.0078125, %v2647_v48 }
 0xcbb   : > { %3760 = vrsqrt.f32 %v2656_v57  ;;  %v2657_v61 = vadd.f32 1e-12, %v2653_v60 }
 0xcbd   : > { %3762 = vrsqrt.f32 %v2657_v61 }
 0xcc5   : > { %v3761_v62 = vpop.eup %3760 }
 0xcc6   : > { %v2664_v16 = vmul.f32 %v3761_v62, %v2636_v40  ;;  %v2649_v21 = vpop.xlane.xlu0 %2648  ;;  %v3783_v40 = vld [vmem:[%s4685_s16 + $0x38] sm:$0xff] (!%p3266_p9)  }
 0xcc7   : > { %v3763_v23 = vpop.eup %3762  ;;  %v2654_v1 = vmul.f32 0.0078125, %v2649_v21  ;;  %3474 = vmatpush3.bf16.msra.mxu1 (!%p3266_p9), %v3783_v40 }
 0xcc8   : > { %v2674_v56 = vmul.f32 %v3264_v63, %v2664_v16  ;;  %v2665_v49 = vmul.f32 %v3763_v23, %v2637_v41  ;;  %v2651_v55 = vpop.xlane.xlu1 %2650 }
 0xcc9   : > { %v2658_v58 = vadd.f32 1e-12, %v2654_v1  ;;  %v2655_v59 = vmul.f32 0.0078125, %v2651_v55 }
 0xcca   : > { %v2684_v2 = vadd.f32 %v3265_v0, %v2674_v56  ;;  %v2675_v3 = vmul.f32 %v3264_v63, %v2665_v49 }
 0xccb   : > { %3764 = vrsqrt.f32 %v2658_v58  ;;  %v2659_v51 = vadd.f32 1e-12, %v2655_v59 }
 0xccc   : > { %2688 = vst [vmem:[#allocation2] sm:$0xff] %v2684_v2  ;;  %v2685_v46 = vadd.f32 %v3265_v0, %v2675_v3 }
 0xccd   : > { %3766 = vrsqrt.f32 %v2659_v51 }
 0xcce   : > { %2689 = vst [vmem:[#allocation2 + $0x8] sm:$0xff] %v2685_v46 }
 0xcd3   : > { %v2696_v26 = vld [vmem:[#allocation2] sm:$0x1] (!%p3266_p9) }
 0xcd5   : > { %v3765_v4 = vpop.eup %3764 }
 0xcd6   : > { %v2666_v5 = vmul.f32 %v3765_v4, %v2638_v44 }
 0xcd7   : > { %v3767_v7 = vpop.eup %3766 }
 0xcd8   : > { %v2676_v9 = vmul.f32 %v3264_v63, %v2666_v5  ;;  %v2667_v12 = vmul.f32 %v3767_v7, %v2639_v52  ;;  %2695 = sbr.rel (%p3266_p9) target bundleno = 3747 (0xea3), region = 112 }
 0xcda   : > { %v2686_v17 = vadd.f32 %v3265_v0, %v2676_v9  ;;  %v2677_v18 = vmul.f32 %v3264_v63, %v2667_v12 }
 0xcdc   : > { %2690 = vst [vmem:[#allocation2 + $0x10] sm:$0xff] %v2686_v17  ;;  %v2687_v14 = vadd.f32 %v3265_v0, %v2677_v18 }
 0xcde   : > { %2691 = vst [vmem:[#allocation2 + $0x18] sm:$0xff] %v2687_v14 }
 0xce3   : > { %v2697_v30 = vld [vmem:[#allocation2 + $0x10] sm:$0x1] }
 0xce4   : > { %v2699_v33 = vrot.slane %v2697_v30, 7 }
 0xce6   : > { %v2702_v36 = vsel %vm2701_vm3, %v2696_v26, %v2699_v33 }
 0xce7   : > { %v2703_v37 = vpack.c.bf16 %v2702_v36, %v2702_v36 }
 0xce9   : > { %3456 = vmatmul.mubr.bf16.vlgmr.msra.gmra.mrb[0].mxu0 %v2703_v37 }
 0xdbc   : > { %v2809_v41 = vpop.f32.mrb[0].mxu0 }
 0xdbd   : > { %v2810_v27 = vadd.f32 %v3267_v11, %v2809_v41  ;;  %v3457_v31 = vpop.f32.mrb[1].mxu0 }
 0xdbe   : > { %v2812_v34 = vpop.f32.mrb[2].mxu0 }
 0xdbf   : > { %3784 = vtanh.f32 %v2810_v27  ;;  %v3458_v42 = vpop.f32.mrb[3].mxu0 }
 0xdc9   : > { %v3785_v50 = vpop.eup %3784 }
 0xdca   : > { %v2816_v44 = vpack.c.bf16 %v3785_v50, %v3785_v50 }
 0xdcc   : > { %3476 = vmatmul.mubr.bf16.vlgmr.msra.gmra.mrb[0].mxu1 %v2816_v44 }
 0xe9f   : > { %v2922_v52 = vpop.f32.mrb[0].mxu1 }
 0xea0   : > { %v2923_v43 = vadd.f32 %v3276_v20, %v2922_v52  ;;  %v3477_v15 = vpop.f32.mrb[1].mxu1 }
 0xea1   : > { %v2925_v53 = vpop.f32.mrb[2].mxu1 }
 0xea2   : > { %2928 = vst [vmem:[#allocation7] sm:$0x3] %v2923_v43  ;;  %v3478_v45 = vpop.f32.mrb[3].mxu1 }
 0xea3 PF: > { %s4688_s10 = sld [smem:[#allocation13_spill]]  ;;  %s3906_s27 = smov [#allocation7]  }
 0xea4   : > { %s2938_s4 = sshll.u32 %s3906_s27, 4  ;;  %s2939_s4 = int_to_ptr.vmem [resolvable:$true] %s2938_s4 }
 0xea5   : > { %s3816_s24 = scalar_lea.vmem %s2939_s4, 32  ;;  %p3823_p12 = scmp.lt.s32.totalorder %s2939_s4, %s2939_s4 }
 0xea6   : > { %p3817_p6 = scmp.ne.s32.totalorder %s2939_s4, %s3816_s24  ;;  %p3824_p0 = scmp.lt.s32.totalorder %s3816_s24, %s3816_s24 }
 0xea8   : > { %p3825_p1 = por %p3824_p0, %p3823_p12 }
 0xea9   : > { %s4689_s18 = sadd.s32 4294967295, %s4688_s10  }
 0xeaa   : > { %p4572_p5 = scmp.eq.s32.totalorder %s4689_s18, 1 }
 0xeac   : > { %p3818_p8 = pnand %p3817_p6, %p4572_p5 }
 0xeae   : > { %p3819_p10 = pneg %p3818_p8 }
 0xeb0   : > { %p3826_p2 = pnand %p3825_p1, %p3819_p10 }
 0xeb2   : > { %3829 = shalt.err (!%p3826_p2)
}
 0xeb3   : > { %s4691_s23 = sld [smem:[#allocation28_spill]] }
 0xeb9   : > { %s4692_s0 = smov %s4691_s23  ;;  %s3830_s6 = scalar_lea.hbm %s4691_s23, 32 }
 0xeba   : > { %p3831_p11 = scmp.ne.s32.totalorder %s4692_s0, %s3830_s6  ;;  %p3836_p4 = scmp.lt.u32.totalorder %s3830_s6, %s4692_s0 }
 0xebc   : > { %p3832_p13 = pnand %p3831_p11, %p4572_p5 }
 0xebe   : > { %p3833_p3 = pneg %p3832_p13 }
 0xec0   : > { %p3838_p7 = pnand %p3836_p4, %p3833_p3 }
 0xec2   : > { %3841 = shalt.err (!%p3838_p7)
}
 0xec3   : > { %3502 = dma.vmem_to_hbm [thread:$0]  (%p4572_p5), %s2939_s4, 32, %s4692_s0, [#allocation6]  }
 0xec4   : > { %3871 = dma.done.wait (%p4572_p5), [#allocation6], 32  }
 0xec5   : > { %3873 = vsyncadd (%p4572_p5), [#allocation6], 4294967264 }
 0xec6 PF: > { %s4693_s20 = sld [smem:[#allocation13_spill]]  ;;  %s4694_s1 = sld [smem:[#allocation10_spill]] }
 0xec7   : > { %s4695_s22 = sld [smem:[#allocation11_spill]]  ;;  %s4696_s23 = sld [smem:[#allocation15_spill]] }
 0xec8   : > { %s4697_s24 = sld [smem:[#allocation12_spill]]  ;;  %s4698_s2 = sld [smem:[#allocation14_spill]] }
 0xecc   : > { %s34_s25 = sadd.s32 1, %s4693_s20  }
 0xecd   : > { %p31_p9 = scmp.ge.s32.totalorder %s34_s25, 4  }
 0xecf   :  { %33 = sbr.rel (!%p31_p9) target bundleno = 19 (0x13), region = 186 }
 0xed6   :  { %2951 = vsyncpa [#allocation5], 1 }
 0xed7   :  { %2953 = vsyncpa [#allocation5 + $0x1], 1 }
 0xed8   :  { %2954 = vsyncpa [#allocation6], 1 }
 0xed9   :  { %2956 = vsyncpa [#allocation6 + $0x1], 1 }

</bundles_post_ra>
